<compile_context>
chip_gen: v7x
topology: tpu7x:2x2x1
jax: 0.10.0
libtpu: 0.0.40
codegen_flags: <defaults>
</compile_context>

<pallas_src>
import jax
import jax.numpy as jnp
from jax import lax
from jax.experimental import pallas as pl
from jax.experimental.pallas import tpu as pltpu

EPS = 1e-5
LANE = 128                      # channel dims padded to multiples of this
TM_ROWS = 512                   # row-tile cap (matmul + elementwise kernels)
_VMEM_LIMIT = 48 * 1024 * 1024  # safe on v7x (64 MiB), roomy on v5e/v6e


def _round_up(x, m):
    return (x + m - 1) // m * m


def _row_tile(p, cap=TM_ROWS):
    """Row tile + padded row count.  Prefers >=2 grid steps (v7x megacore)."""
    p8 = _round_up(p, 8)
    tm = min(cap, p8)
    if p8 >= 16 and tm >= p8:
        tm = _round_up(p8 // 2, 8)
    return tm, _round_up(p, tm)


def _images_per_block(n, m):
    """Images per conv2 grid step: aim for M >= 256 rows per matmul while
    keeping at least two grid steps (megacore / pipeline depth)."""
    best = 1
    for ib in range(1, n + 1):
        if n % ib:
            continue
        if n >= 2 and n // ib < 2:
            break
        best = ib
        if ib * m >= 256:
            break
    return best


def _pad2(a, rows, cols):
    return jnp.pad(a, ((0, rows - a.shape[0]), (0, cols - a.shape[1])))


def _compiler_params():
    return pltpu.CompilerParams(dimension_semantics=("parallel",),
                                vmem_limit_bytes=_VMEM_LIMIT)


# ------------------------------------------------------------------ kernels --
def _write_stats(st_ref, acc):
    # Two 1-row stores: row 0 = per-channel sum, row 1 = per-channel sum-sq
    # (rows 2..7 of the 8-row stats block are never read).
    st_ref[0:1, :] = jnp.sum(acc, axis=0, keepdims=True)
    st_ref[1:2, :] = jnp.sum(acc * acc, axis=0, keepdims=True)


def _mm_stats_kernel(x_ref, w_ref, y_ref, st_ref):
    acc = jnp.dot(x_ref[...], w_ref[...], preferred_element_type=jnp.float32)
    y_ref[...] = acc.astype(y_ref.dtype)
    _write_stats(st_ref, acc)


def _make_bn_mm_stats_kernel(valid_rows, padded_rows, tm):
    """Fused epilogue->matmul: relu(y*scale + shift) -> bf16 -> matmul + stats."""
    needs_mask = padded_rows != valid_rows

    def kernel(y_ref, sc_ref, sh_ref, w_ref, o_ref, st_ref):
        a = jnp.maximum(
            y_ref[...].astype(jnp.float32) * sc_ref[...] + sh_ref[...], 0.0)
        if needs_mask:
            # Zero padded tail rows so downstream BN statistics stay exact.
            # TODO(synk): gate on the last grid step (lax.cond) so non-tail
            # tiles skip the iota/compare/select entirely.
            rows = (pl.program_id(0) * tm
                    + lax.broadcasted_iota(jnp.int32, a.shape, 0))
            a = jnp.where(rows < valid_rows, a, 0.0)
        acc = jnp.dot(a.astype(jnp.bfloat16), w_ref[...],
                      preferred_element_type=jnp.float32)
        o_ref[...] = acc.astype(o_ref.dtype)
        _write_stats(st_ref, acc)

    return kernel


def _make_conv3x3_kernel(taps, rows_per_phase, wo, m, ib):
    """3x3 conv as three row-contiguous matmuls (K = 3*Cin per tap) on the
    x-pregathered, y-phase-decomposed input; f32 accumulation + BN partials."""

    def kernel(g_ref, w_ref, y_ref, st_ref):
        k3 = g_ref.shape[-1]
        cout = w_ref.shape[-1]
        acc = jnp.zeros((ib * m, cout), jnp.float32)
        for dy, (ph, oy) in enumerate(taps):
            r0 = ph * rows_per_phase + oy * wo      # static offset
            # TODO(synk): r0 is 8-aligned only when Wo % 8 == 0; otherwise
            # Mosaic inserts one sublane-shift copy per unaligned tap (<= 2).
            a = g_ref[:, pl.ds(r0, m), :].reshape(ib * m, k3)
            acc = acc + jnp.dot(a, w_ref[dy],
                                preferred_element_type=jnp.float32)
        y_ref[...] = acc.astype(y_ref.dtype)
        _write_stats(st_ref, acc)

    return kernel


def _bn_add_relu_kernel(y_ref, sc_ref, sh_ref, r_ref, rsc_ref, rsh_ref, o_ref):
    v = (y_ref[...].astype(jnp.float32) * sc_ref[...] + sh_ref[...]
         + r_ref[...].astype(jnp.float32) * rsc_ref[...] + rsh_ref[...])
    o_ref[...] = jnp.maximum(v, 0.0).astype(o_ref.dtype)


# ----------------------------------------------------------------- wrappers --
def _reduce_stats(st, nblk, c):
    st = st.reshape(nblk, 8, c)
    return st[:, 0, :].sum(axis=0), st[:, 1, :].sum(axis=0)


def _mm_stats(x, w, tm):
    """x: (P, K) bf16 (P multiple of tm, K multiple of 128); w: (K, C) bf16.
    Returns y = x @ w (bf16) plus exact f32 per-channel sum / sum-of-squares."""
    p, k = x.shape
    c = w.shape[1]
    nt = p // tm
    y, st = pl.pallas_call(
        _mm_stats_kernel,
        grid=(nt,),
        in_specs=[pl.BlockSpec((tm, k), lambda i: (i, 0)),
                  pl.BlockSpec((k, c), lambda i: (0, 0))],
        out_specs=[pl.BlockSpec((tm, c), lambda i: (i, 0)),
                   pl.BlockSpec((8, c), lambda i: (i, 0))],
        out_shape=[jax.ShapeDtypeStruct((p, c), jnp.bfloat16),
                   jax.ShapeDtypeStruct((nt * 8, c), jnp.float32)],
        compiler_params=_compiler_params(),
        cost_estimate=pl.CostEstimate(
            flops=2 * p * k * c, transcendentals=0,
            bytes_accessed=2 * p * k + 2 * k * c + 2 * p * c + 32 * nt * c),
    )(x, w)
    s1, s2 = _reduce_stats(st, nt, c)
    return y, s1, s2


def _bn_mm_stats(y_in, scale, shift, w, valid_rows, tm):
    """Fused: a = relu(y_in*scale + shift) (bf16); returns a @ w (bf16) + stats."""
    p, k = y_in.shape
    c = w.shape[1]
    nt = p // tm
    y, st = pl.pallas_call(
        _make_bn_mm_stats_kernel(valid_rows, p, tm),
        grid=(nt,),
        in_specs=[pl.BlockSpec((tm, k), lambda i: (i, 0)),
                  pl.BlockSpec((1, k), lambda i: (0, 0)),
                  pl.BlockSpec((1, k), lambda i: (0, 0)),
                  pl.BlockSpec((k, c), lambda i: (0, 0))],
        out_specs=[pl.BlockSpec((tm, c), lambda i: (i, 0)),
                   pl.BlockSpec((8, c), lambda i: (i, 0))],
        out_shape=[jax.ShapeDtypeStruct((p, c), jnp.bfloat16),
                   jax.ShapeDtypeStruct((nt * 8, c), jnp.float32)],
        compiler_params=_compiler_params(),
        cost_estimate=pl.CostEstimate(
            flops=2 * p * k * c + 3 * p * k, transcendentals=0,
            bytes_accessed=2 * p * k + 2 * k * c + 2 * p * c + 32 * nt * c),
    )(y_in, scale, shift, w)
    s1, s2 = _reduce_stats(st, nt, c)
    return y, s1, s2


def _conv3x3_stats(g, w, taps, rows_per_phase, wo, m, ib):
    """g: (N, stride*rows_per_phase, 3*Cin) bf16 ; w: (3, 3*Cin, Cout) bf16."""
    n = g.shape[0]
    nsteps = n // ib
    rows, k3 = g.shape[1], g.shape[2]
    cout = w.shape[-1]
    y, st = pl.pallas_call(
        _make_conv3x3_kernel(taps, rows_per_phase, wo, m, ib),
        grid=(nsteps,),
        in_specs=[pl.BlockSpec((ib, rows, k3), lambda i: (i, 0, 0)),
                  pl.BlockSpec((3, k3, cout), lambda i: (0, 0, 0))],
        out_specs=[pl.BlockSpec((ib * m, cout), lambda i: (i, 0)),
                   pl.BlockSpec((8, cout), lambda i: (i, 0))],
        out_shape=[jax.ShapeDtypeStruct((n * m, cout), jnp.bfloat16),
                   jax.ShapeDtypeStruct((nsteps * 8, cout), jnp.float32)],
        compiler_params=_compiler_params(),
        cost_estimate=pl.CostEstimate(
            flops=2 * n * m * 3 * k3 * cout, transcendentals=0,
            bytes_accessed=2 * g.size + 2 * w.size + 2 * n * m * cout
            + 32 * nsteps * cout),
    )(g, w)
    s1, s2 = _reduce_stats(st, nsteps, cout)
    return y, s1, s2


def _bn_add_relu(y, scale, shift, r, rscale, rshift, tm, out_dtype):
    p, c = y.shape
    return pl.pallas_call(
        _bn_add_relu_kernel,
        grid=(p // tm,),
        in_specs=[pl.BlockSpec((tm, c), lambda i: (i, 0)),
                  pl.BlockSpec((1, c), lambda i: (0, 0)),
                  pl.BlockSpec((1, c), lambda i: (0, 0)),
                  pl.BlockSpec((tm, c), lambda i: (i, 0)),
                  pl.BlockSpec((1, c), lambda i: (0, 0)),
                  pl.BlockSpec((1, c), lambda i: (0, 0))],
        out_specs=pl.BlockSpec((tm, c), lambda i: (i, 0)),
        out_shape=jax.ShapeDtypeStruct((p, c), out_dtype),
        compiler_params=_compiler_params(),
    )(y, scale, shift, r, rscale, rshift)


def _bn_scale_shift(s1, s2, count, gamma, beta, cpad):
    """Training-mode BN (biased variance) folded into per-channel scale/shift.
    TODO(synk): E[y^2]-mean^2 is cancellation-prone for large-magnitude
    activations; use a shifted / Welford accumulation for production inputs."""
    g = jnp.pad(gamma.astype(jnp.float32), (0, cpad - gamma.shape[0]))
    b = jnp.pad(beta.astype(jnp.float32), (0, cpad - beta.shape[0]))
    mean = s1 / count
    var = jnp.maximum(s2 / count - mean * mean, 0.0)
    scale = g * lax.rsqrt(var + EPS)
    shift = b - mean * scale
    return scale.reshape(1, cpad), shift.reshape(1, cpad)


# -------------------------------------------------------------------- model --
def init_params(key, in_planes, planes, stride, expansion=4):
    exp = expansion * planes
    ks = jax.random.split(key, 12)
    p = {
        # conv weights stored as (Cin[*3*3], Cout) == torch_w.reshape(Cout,-1).T
        "w1": 0.1 * jax.random.normal(ks[0], (in_planes, planes), jnp.float32),
        "g1": 1.0 + 0.1 * jax.random.normal(ks[1], (planes,), jnp.float32),
        "b1": 0.1 * jax.random.normal(ks[2], (planes,), jnp.float32),
        "w2": 0.1 * jax.random.normal(ks[3], (planes * 9, planes), jnp.float32),
        "g2": 1.0 + 0.1 * jax.random.normal(ks[4], (planes,), jnp.float32),
        "b2": 0.1 * jax.random.normal(ks[5], (planes,), jnp.float32),
        "w3": 0.1 * jax.random.normal(ks[6], (planes, exp), jnp.float32),
        "g3": 1.0 + 0.1 * jax.random.normal(ks[7], (exp,), jnp.float32),
        "b3": 0.1 * jax.random.normal(ks[8], (exp,), jnp.float32),
    }
    if stride != 1 or in_planes != exp:
        p["ws"] = 0.1 * jax.random.normal(ks[9], (in_planes, exp), jnp.float32)
        p["gs"] = 1.0 + 0.1 * jax.random.normal(ks[10], (exp,), jnp.float32)
        p["bs"] = 0.1 * jax.random.normal(ks[11], (exp,), jnp.float32)
    return p


def bottleneck_forward(x_nchw, p, stride):
    N, Cin, H, W = x_nchw.shape
    planes = p["w1"].shape[1]
    exp = p["w3"].shape[1]
    cin_p = _round_up(Cin, LANE)
    cpl_p = _round_up(planes, LANE)
    cex_p = _round_up(exp, LANE)

    Ho = (H + 2 - 3) // stride + 1
    Wo = (W + 2 - 3) // stride + 1
    M = Ho * Wo
    P1, P2 = N * H * W, N * Ho * Wo
    # TODO(synk): generalize to M % 8 != 0 (needs junk-row masking in conv2).
    assert M % 8 == 0, "per-image output spatial size must be 8-aligned"

    x_nhwc = jnp.transpose(x_nchw, (0, 2, 3, 1)).astype(jnp.float32)

    # ---- conv1 (1x1) + bn1 stats --------------------------------------------
    tm1, p1p = _row_tile(P1)
    x1 = _pad2(x_nhwc.reshape(P1, Cin), p1p, cin_p).astype(jnp.bfloat16)
    w1 = _pad2(p["w1"], cin_p, cpl_p).astype(jnp.bfloat16)
    y1, s1, q1 = _mm_stats(x1, w1, tm1)
    sc1, sh1 = _bn_scale_shift(s1, q1, P1, p["g1"], p["b1"], cpl_p)

    # ---- bn1 + relu fused into the conv2 input prep ---------------------------
    # The affine+ReLU is evaluated inside the XLA fusion that builds the
    # gathered conv2 input (no separate Pallas pass, no extra a1 round trip).
    # Padding happens AFTER relu so the 3x3 halo is exactly zero.
    a1 = jnp.maximum(
        y1[:P1].astype(jnp.float32).reshape(N, H, W, cpl_p)
        * sc1.reshape(1, 1, 1, cpl_p) + sh1.reshape(1, 1, 1, cpl_p), 0.0
    ).astype(jnp.bfloat16)
    a1p = jnp.pad(a1, ((0, 0), (1, 1), (1, 1), (0, 0)))

    # x-gather: stack the three dx taps along the lane (channel) axis.
    cols = [a1p[:, :, dx:dx + stride * (Wo - 1) + 1:stride, :]
            for dx in range(3)]
    gx = jnp.concatenate(cols, axis=-1)              # (N, H+2, Wo, 3*cpl_p)

    # y-phase decomposition: one flattened slab per y-parity class so every dy
    # tap is a single contiguous row slice inside the kernel (no 9x im2col).
    hpmax = Ho + 2 // stride
    rpp = _round_up(hpmax * Wo, 8)                   # rows per phase slab
    slabs = []
    for ph in range(stride):
        sl = gx[:, ph::stride, :, :][:, :hpmax]
        sl = jnp.pad(sl, ((0, 0), (0, hpmax - sl.shape[1]), (0, 0), (0, 0)))
        sl = sl.reshape(N, hpmax * Wo, 3 * cpl_p)
        sl = jnp.pad(sl, ((0, 0), (0, rpp - hpmax * Wo), (0, 0)))
        slabs.append(sl)
    g = slabs[0] if stride == 1 else jnp.concatenate(slabs, axis=1)

    # Per-dy weights (3*cpl_p, cpl_p), dx-major on the contraction axis.
    w2 = p["w2"].reshape(planes, 3, 3, planes).transpose(1, 2, 0, 3)
    w2 = jnp.pad(w2, ((0, 0), (0, 0), (0, cpl_p - planes),
                      (0, cpl_p - planes)))
    w2 = w2.reshape(3, 3 * cpl_p, cpl_p).astype(jnp.bfloat16)

    taps = [(dy % stride, dy // stride) for dy in range(3)]
    ib = _images_per_block(N, M)
    y2, s2, q2 = _conv3x3_stats(g, w2, taps, rpp, Wo, M, ib)
    sc2, sh2 = _bn_scale_shift(s2, q2, P2, p["g2"], p["b2"], cpl_p)

    # ---- shortcut --------------------------------------------------------------
    tm3, p3p = _row_tile(P2)
    if stride != 1 or Cin != exp:
        xs = x_nhwc[:, ::stride, ::stride, :][:, :Ho, :Wo, :].reshape(P2, Cin)
        xs = _pad2(xs, p3p, cin_p).astype(jnp.bfloat16)
        ws = _pad2(p["ws"], cin_p, cex_p).astype(jnp.bfloat16)
        ysc, ss, qs = _mm_stats(xs, ws, tm3)
        rsc, rsh = _bn_scale_shift(ss, qs, P2, p["gs"], p["bs"], cex_p)
    else:
        ysc = _pad2(x_nhwc.reshape(P2, Cin), p3p, cex_p)     # identity shortcut
        rsc = jnp.ones((1, cex_p), jnp.float32)
        rsh = jnp.zeros((1, cex_p), jnp.float32)

    # ---- conv3 (1x1): fuses bn2+relu of its input; then bn3 + add + relu -------
    y2p = jnp.pad(y2, ((0, p3p - P2), (0, 0)))
    w3 = _pad2(p["w3"], cpl_p, cex_p).astype(jnp.bfloat16)
    y3, s3, q3 = _bn_mm_stats(y2p, sc2, sh2, w3, P2, tm3)
    sc3, sh3 = _bn_scale_shift(s3, q3, P2, p["g3"], p["b3"], cex_p)
    # Final output kept in f32 to match the module's dtype; switch to bf16 here
    # if the downstream consumer accepts it (halves the last HBM write).
    out = _bn_add_relu(y3, sc3, sh3, ysc, rsc, rsh, tm3, jnp.float32)
    out = out[:P2, :exp]
    return jnp.transpose(out.reshape(N, Ho, Wo, exp), (0, 3, 1, 2))


# ---------------------------------------------------------------- reference --
def ref_forward(x, p, stride, planes, in_planes, exp):
    def bn(y, g, b):
        mean = y.mean(axis=(0, 2, 3), keepdims=True)
        var = ((y - mean) ** 2).mean(axis=(0, 2, 3), keepdims=True)
        return ((y - mean) * lax.rsqrt(var + EPS) * g.reshape(1, -1, 1, 1)
                + b.reshape(1, -1, 1, 1))

    def conv1x1(a, w):
        return jnp.einsum("nchw,cd->ndhw", a, w, precision=lax.Precision.HIGHEST)

    out = jax.nn.relu(bn(conv1x1(x, p["w1"]), p["g1"], p["b1"]))
    w2 = p["w2"].T.reshape(planes, planes, 3, 3)             # OIHW
    out = lax.conv_general_dilated(out, w2, (stride, stride), ((1, 1), (1, 1)),
                                   dimension_numbers=("NCHW", "OIHW", "NCHW"),
                                   precision=lax.Precision.HIGHEST)
    out = jax.nn.relu(bn(out, p["g2"], p["b2"]))
    out = bn(conv1x1(out, p["w3"]), p["g3"], p["b3"])
    if stride != 1 or in_planes != exp:
        sc = bn(conv1x1(x[:, :, ::stride, ::stride], p["ws"]), p["gs"], p["bs"])
    else:
        sc = x
    return jax.nn.relu(out + sc)


# --------------------------------------------------------------------- main --
if __name__ == "__main__":
    N, in_planes, H, W = 2, 4, 16, 16
    planes, stride = 4, 2
    exp = 4 * planes

    key = jax.random.PRNGKey(0)
    kx, kp = jax.random.split(key)
    x = jax.random.normal(kx, (N, in_planes, H, W), jnp.float32)
    params = init_params(kp, in_planes, planes, stride)

    # Make inputs / conv weights exactly bf16-representable so the f32 reference
    # and the bf16-operand MXU kernels start from identical values; remaining
    # divergence comes only from the bf16 activation casts between stages.
    x = x.astype(jnp.bfloat16).astype(jnp.float32)
    params = {k: (v.astype(jnp.bfloat16).astype(jnp.float32)
                  if k.startswith("w") else v) for k, v in params.items()}

    fwd = jax.jit(bottleneck_forward, static_argnums=(2,))
    out = jax.block_until_ready(fwd(x, params, stride))

    ref = ref_forward(x, params, stride, planes, in_planes, exp)
    Ho = (H + 2 - 3) // stride + 1
    assert out.shape == ref.shape == (N, exp, Ho, Ho)
    max_err = float(jnp.max(jnp.abs(out - ref)))
    # Tolerance reflects bf16 MXU operands and bf16 inter-stage activations at
    # tiny toy channel counts (K=4), where training-mode BN amplifies rounding
    # far more than real ResNet widths.
    assert jnp.allclose(out, ref, atol=5e-2, rtol=5e-2), max_err
    print("KERNEL_OK")
</pallas_src>

<mosaic_0001>
module attributes {stable_mosaic.version = 11 : i64} {
  func.func @_mm_stats_kernel(%arg0: i32, %arg1: memref<256x128xbf16, #tpu.memory_space<vmem>>, %arg2: memref<128x128xbf16, #tpu.memory_space<vmem>>, %arg3: memref<256x128xbf16, #tpu.memory_space<vmem>>, %arg4: memref<8x128xf32, #tpu.memory_space<vmem>>) attributes {dimension_semantics = [#tpu.dimension_semantics<parallel>], iteration_bounds = array<i64: 2>, scalar_prefetch = 0 : i64, scratch_operands = 0 : i64, tpu.core_type = #tpu.core_type<tc>, window_params = [{transform_indices = @transform_0, window_bounds = array<i64: 256, 128>}, {pipeline_mode = #tpu.pipeline_mode<synchronous>, transform_indices = @transform_1, window_bounds = array<i64: 128, 128>}, {transform_indices = @transform_2, window_bounds = array<i64: 256, 128>}, {transform_indices = @transform_3, window_bounds = array<i64: 8, 128>}]} {
    %c0 = arith.constant 0 : index
    %c0_0 = arith.constant 0 : index
    %0 = vector.load %arg1[%c0, %c0_0] : memref<256x128xbf16, #tpu.memory_space<vmem>>, vector<256x128xbf16>
    %c0_1 = arith.constant 0 : index
    %c0_2 = arith.constant 0 : index
    %1 = vector.load %arg2[%c0_1, %c0_2] : memref<128x128xbf16, #tpu.memory_space<vmem>>, vector<128x128xbf16>
    %cst = arith.constant dense<0.000000e+00> : vector<256x128xf32>
    %2 = tpu.matmul %0, %1, %cst {dimension_numbers = #tpu.dot_dimension_numbers<[1], [0], [0], [1], [0, 0, 1, 1], [], []>} : vector<256x128xbf16>, vector<128x128xbf16>, vector<256x128xf32> -> vector<256x128xf32>
    %3 = arith.truncf %2 : vector<256x128xf32> to vector<256x128xbf16>
    %c0_3 = arith.constant 0 : index
    %c0_4 = arith.constant 0 : index
    %4 = vector.load %arg3[%c0_3, %c0_4] : memref<256x128xbf16, #tpu.memory_space<vmem>>, vector<256x128xbf16>
    tpu.vector_store %arg3[%c0_3, %c0_4], %3 {strides = array<i32>} : memref<256x128xbf16, #tpu.memory_space<vmem>>, vector<256x128xbf16>,
    %cst_5 = arith.constant dense<0.000000e+00> : vector<128xf32>
    %5 = vector.multi_reduction <add>, %2, %cst_5 [0] : vector<256x128xf32> to vector<128xf32>
    %6 = vector.shape_cast %5 : vector<128xf32> to vector<1x128xf32>
    %c0_6 = arith.constant 0 : index
    %c0_7 = arith.constant 0 : index
    %7 = vector.load %arg4[%c0_6, %c0_7] : memref<8x128xf32, #tpu.memory_space<vmem>>, vector<1x128xf32>
    tpu.vector_store %arg4[%c0_6, %c0_7], %6 {strides = array<i32>} : memref<8x128xf32, #tpu.memory_space<vmem>>, vector<1x128xf32>,
    %8 = arith.mulf %2, %2 : vector<256x128xf32>
    %cst_8 = arith.constant dense<0.000000e+00> : vector<128xf32>
    %9 = vector.multi_reduction <add>, %8, %cst_8 [0] : vector<256x128xf32> to vector<128xf32>
    %10 = vector.shape_cast %9 : vector<128xf32> to vector<1x128xf32>
    %c1 = arith.constant 1 : index
    %c0_9 = arith.constant 0 : index
    %11 = vector.load %arg4[%c1, %c0_9] : memref<8x128xf32, #tpu.memory_space<vmem>>, vector<1x128xf32>
    tpu.vector_store %arg4[%c1, %c0_9], %10 {strides = array<i32>} : memref<8x128xf32, #tpu.memory_space<vmem>>, vector<1x128xf32>,
    return
  }
  func.func @transform_0(%arg0: i32) -> (i32, i32) {
    %c0_i32 = arith.constant 0 : i32
    %c0_i32_0 = arith.constant 0 : i32
    return %arg0, %c0_i32 : i32, i32
  }
  func.func @transform_1(%arg0: i32) -> (i32, i32) {
    %c0_i32 = arith.constant 0 : i32
    %c0_i32_0 = arith.constant 0 : i32
    %c0_i32_1 = arith.constant 0 : i32
    return %c0_i32, %c0_i32_0 : i32, i32
  }
  func.func @transform_2(%arg0: i32) -> (i32, i32) {
    %c0_i32 = arith.constant 0 : i32
    %c0_i32_0 = arith.constant 0 : i32
    return %arg0, %c0_i32 : i32, i32
  }
  func.func @transform_3(%arg0: i32) -> (i32, i32) {
    %c0_i32 = arith.constant 0 : i32
    %c0_i32_0 = arith.constant 0 : i32
    return %arg0, %c0_i32 : i32, i32
  }
}

module attributes {stable_mosaic.version = 11 : i64} {
  func.func @kernel(%arg0: i32, %arg1: memref<1x144x384xbf16, #tpu.memory_space<vmem>>, %arg2: memref<3x384x128xbf16, #tpu.memory_space<vmem>>, %arg3: memref<64x128xbf16, #tpu.memory_space<vmem>>, %arg4: memref<8x128xf32, #tpu.memory_space<vmem>>) attributes {dimension_semantics = [#tpu.dimension_semantics<parallel>], iteration_bounds = array<i64: 2>, scalar_prefetch = 0 : i64, scratch_operands = 0 : i64, tpu.core_type = #tpu.core_type<tc>, window_params = [{transform_indices = @transform_0, window_bounds = array<i64: 1, 144, 384>}, {pipeline_mode = #tpu.pipeline_mode<synchronous>, transform_indices = @transform_1, window_bounds = array<i64: 3, 384, 128>}, {transform_indices = @transform_2, window_bounds = array<i64: 64, 128>}, {transform_indices = @transform_3, window_bounds = array<i64: 8, 128>}]} {
    %cst = arith.constant 0.000000e+00 : f32
    %0 = vector.broadcast %cst : f32 to vector<64x128xf32>
    %c0 = arith.constant 0 : index
    %c0_0 = arith.constant 0 : index
    %c0_1 = arith.constant 0 : index
    %1 = vector.load %arg1[%c0, %c0_0, %c0_1] : memref<1x144x384xbf16, #tpu.memory_space<vmem>>, vector<1x64x384xbf16>
    %2 = vector.shape_cast %1 : vector<1x64x384xbf16> to vector<64x384xbf16>
    %c0_2 = arith.constant 0 : index
    %c0_3 = arith.constant 0 : index
    %c0_4 = arith.constant 0 : index
    %3 = vector.load %arg2[%c0_2, %c0_3, %c0_4] : memref<3x384x128xbf16, #tpu.memory_space<vmem>>, vector<1x384x128xbf16>
    %4 = vector.shape_cast %3 : vector<1x384x128xbf16> to vector<384x128xbf16>
    %cst_5 = arith.constant dense<0.000000e+00> : vector<64x128xf32>
    %5 = tpu.matmul %2, %4, %cst_5 {dimension_numbers = #tpu.dot_dimension_numbers<[1], [0], [0], [1], [0, 0, 1, 1], [], []>} : vector<64x384xbf16>, vector<384x128xbf16>, vector<64x128xf32> -> vector<64x128xf32>
    %6 = arith.addf %0, %5 : vector<64x128xf32>
    %c0_6 = arith.constant 0 : index
    %c72 = arith.constant 72 : index
    %c0_7 = arith.constant 0 : index
    %7 = vector.load %arg1[%c0_6, %c72, %c0_7] : memref<1x144x384xbf16, #tpu.memory_space<vmem>>, vector<1x64x384xbf16>
    %8 = vector.shape_cast %7 : vector<1x64x384xbf16> to vector<64x384xbf16>
    %c1 = arith.constant 1 : index
    %c0_8 = arith.constant 0 : index
    %c0_9 = arith.constant 0 : index
    %9 = vector.load %arg2[%c1, %c0_8, %c0_9] : memref<3x384x128xbf16, #tpu.memory_space<vmem>>, vector<1x384x128xbf16>
    %10 = vector.shape_cast %9 : vector<1x384x128xbf16> to vector<384x128xbf16>
    %cst_10 = arith.constant dense<0.000000e+00> : vector<64x128xf32>
    %11 = tpu.matmul %8, %10, %cst_10 {dimension_numbers = #tpu.dot_dimension_numbers<[1], [0], [0], [1], [0, 0, 1, 1], [], []>} : vector<64x384xbf16>, vector<384x128xbf16>, vector<64x128xf32> -> vector<64x128xf32>
    %12 = arith.addf %6, %11 : vector<64x128xf32>
    %c0_11 = arith.constant 0 : index
    %c8 = arith.constant 8 : index
    %c0_12 = arith.constant 0 : index
    %13 = vector.load %arg1[%c0_11, %c8, %c0_12] : memref<1x144x384xbf16, #tpu.memory_space<vmem>>, vector<1x64x384xbf16>
    %14 = vector.shape_cast %13 : vector<1x64x384xbf16> to vector<64x384xbf16>
    %c2 = arith.constant 2 : index
    %c0_13 = arith.constant 0 : index
    %c0_14 = arith.constant 0 : index
    %15 = vector.load %arg2[%c2, %c0_13, %c0_14] : memref<3x384x128xbf16, #tpu.memory_space<vmem>>, vector<1x384x128xbf16>
    %16 = vector.shape_cast %15 : vector<1x384x128xbf16> to vector<384x128xbf16>
    %cst_15 = arith.constant dense<0.000000e+00> : vector<64x128xf32>
    %17 = tpu.matmul %14, %16, %cst_15 {dimension_numbers = #tpu.dot_dimension_numbers<[1], [0], [0], [1], [0, 0, 1, 1], [], []>} : vector<64x384xbf16>, vector<384x128xbf16>, vector<64x128xf32> -> vector<64x128xf32>
    %18 = arith.addf %12, %17 : vector<64x128xf32>
    %19 = arith.truncf %18 : vector<64x128xf32> to vector<64x128xbf16>
    %c0_16 = arith.constant 0 : index
    %c0_17 = arith.constant 0 : index
    %20 = vector.load %arg3[%c0_16, %c0_17] : memref<64x128xbf16, #tpu.memory_space<vmem>>, vector<64x128xbf16>
    tpu.vector_store %arg3[%c0_16, %c0_17], %19 {strides = array<i32>} : memref<64x128xbf16, #tpu.memory_space<vmem>>, vector<64x128xbf16>,
    %cst_18 = arith.constant dense<0.000000e+00> : vector<128xf32>
    %21 = vector.multi_reduction <add>, %18, %cst_18 [0] : vector<64x128xf32> to vector<128xf32>
    %22 = vector.shape_cast %21 : vector<128xf32> to vector<1x128xf32>
    %c0_19 = arith.constant 0 : index
    %c0_20 = arith.constant 0 : index
    %23 = vector.load %arg4[%c0_19, %c0_20] : memref<8x128xf32, #tpu.memory_space<vmem>>, vector<1x128xf32>
    tpu.vector_store %arg4[%c0_19, %c0_20], %22 {strides = array<i32>} : memref<8x128xf32, #tpu.memory_space<vmem>>, vector<1x128xf32>,
    %24 = arith.mulf %18, %18 : vector<64x128xf32>
    %cst_21 = arith.constant dense<0.000000e+00> : vector<128xf32>
    %25 = vector.multi_reduction <add>, %24, %cst_21 [0] : vector<64x128xf32> to vector<128xf32>
    %26 = vector.shape_cast %25 : vector<128xf32> to vector<1x128xf32>
    %c1_22 = arith.constant 1 : index
    %c0_23 = arith.constant 0 : index
    %27 = vector.load %arg4[%c1_22, %c0_23] : memref<8x128xf32, #tpu.memory_space<vmem>>, vector<1x128xf32>
    tpu.vector_store %arg4[%c1_22, %c0_23], %26 {strides = array<i32>} : memref<8x128xf32, #tpu.memory_space<vmem>>, vector<1x128xf32>,
    return
  }
  func.func @transform_0(%arg0: i32) -> (i32, i32, i32) {
    %c0_i32 = arith.constant 0 : i32
    %c0_i32_0 = arith.constant 0 : i32
    %c0_i32_1 = arith.constant 0 : i32
    return %arg0, %c0_i32, %c0_i32_0 : i32, i32, i32
  }
  func.func @transform_1(%arg0: i32) -> (i32, i32, i32) {
    %c0_i32 = arith.constant 0 : i32
    %c0_i32_0 = arith.constant 0 : i32
    %c0_i32_1 = arith.constant 0 : i32
    %c0_i32_2 = arith.constant 0 : i32
    return %c0_i32, %c0_i32_0, %c0_i32_1 : i32, i32, i32
  }
  func.func @transform_2(%arg0: i32) -> (i32, i32) {
    %c0_i32 = arith.constant 0 : i32
    %c0_i32_0 = arith.constant 0 : i32
    return %arg0, %c0_i32 : i32, i32
  }
  func.func @transform_3(%arg0: i32) -> (i32, i32) {
    %c0_i32 = arith.constant 0 : i32
    %c0_i32_0 = arith.constant 0 : i32
    return %arg0, %c0_i32 : i32, i32
  }
}

module attributes {stable_mosaic.version = 11 : i64} {
  func.func @kernel(%arg0: i32, %arg1: memref<64x128xbf16, #tpu.memory_space<vmem>>, %arg2: memref<1x128xf32, #tpu.memory_space<vmem>>, %arg3: memref<1x128xf32, #tpu.memory_space<vmem>>, %arg4: memref<128x128xbf16, #tpu.memory_space<vmem>>, %arg5: memref<64x128xbf16, #tpu.memory_space<vmem>>, %arg6: memref<8x128xf32, #tpu.memory_space<vmem>>) attributes {dimension_semantics = [#tpu.dimension_semantics<parallel>], iteration_bounds = array<i64: 2>, scalar_prefetch = 0 : i64, scratch_operands = 0 : i64, tpu.core_type = #tpu.core_type<tc>, window_params = [{transform_indices = @transform_0, window_bounds = array<i64: 64, 128>}, {pipeline_mode = #tpu.pipeline_mode<synchronous>, transform_indices = @transform_1, window_bounds = array<i64: 1, 128>}, {pipeline_mode = #tpu.pipeline_mode<synchronous>, transform_indices = @transform_2, window_bounds = array<i64: 1, 128>}, {pipeline_mode = #tpu.pipeline_mode<synchronous>, transform_indices = @transform_3, window_bounds = array<i64: 128, 128>}, {transform_indices = @transform_4, window_bounds = array<i64: 64, 128>}, {transform_indices = @transform_5, window_bounds = array<i64: 8, 128>}]} {
    %c0 = arith.constant 0 : index
    %c0_0 = arith.constant 0 : index
    %0 = vector.load %arg1[%c0, %c0_0] : memref<64x128xbf16, #tpu.memory_space<vmem>>, vector<64x128xbf16>
    %1 = arith.extf %0 : vector<64x128xbf16> to vector<64x128xf32>
    %c0_1 = arith.constant 0 : index
    %c0_2 = arith.constant 0 : index
    %2 = vector.load %arg2[%c0_1, %c0_2] : memref<1x128xf32, #tpu.memory_space<vmem>>, vector<1x128xf32>
    %3 = vector.broadcast %2 : vector<1x128xf32> to vector<64x128xf32>
    %4 = arith.mulf %1, %3 : vector<64x128xf32>
    %c0_3 = arith.constant 0 : index
    %c0_4 = arith.constant 0 : index
    %5 = vector.load %arg3[%c0_3, %c0_4] : memref<1x128xf32, #tpu.memory_space<vmem>>, vector<1x128xf32>
    %6 = vector.broadcast %5 : vector<1x128xf32> to vector<64x128xf32>
    %7 = arith.addf %4, %6 : vector<64x128xf32>
    %cst = arith.constant 0.000000e+00 : f32
    %8 = vector.broadcast %cst : f32 to vector<64x128xf32>
    %9 = arith.maximumf %7, %8 : vector<64x128xf32>
    %10 = arith.truncf %9 : vector<64x128xf32> to vector<64x128xbf16>
    %c0_5 = arith.constant 0 : index
    %c0_6 = arith.constant 0 : index
    %11 = vector.load %arg4[%c0_5, %c0_6] : memref<128x128xbf16, #tpu.memory_space<vmem>>, vector<128x128xbf16>
    %cst_7 = arith.constant dense<0.000000e+00> : vector<64x128xf32>
    %12 = tpu.matmul %10, %11, %cst_7 {dimension_numbers = #tpu.dot_dimension_numbers<[1], [0], [0], [1], [0, 0, 1, 1], [], []>} : vector<64x128xbf16>, vector<128x128xbf16>, vector<64x128xf32> -> vector<64x128xf32>
    %13 = arith.truncf %12 : vector<64x128xf32> to vector<64x128xbf16>
    %c0_8 = arith.constant 0 : index
    %c0_9 = arith.constant 0 : index
    %14 = vector.load %arg5[%c0_8, %c0_9] : memref<64x128xbf16, #tpu.memory_space<vmem>>, vector<64x128xbf16>
    tpu.vector_store %arg5[%c0_8, %c0_9], %13 {strides = array<i32>} : memref<64x128xbf16, #tpu.memory_space<vmem>>, vector<64x128xbf16>,
    %cst_10 = arith.constant dense<0.000000e+00> : vector<128xf32>
    %15 = vector.multi_reduction <add>, %12, %cst_10 [0] : vector<64x128xf32> to vector<128xf32>
    %16 = vector.shape_cast %15 : vector<128xf32> to vector<1x128xf32>
    %c0_11 = arith.constant 0 : index
    %c0_12 = arith.constant 0 : index
    %17 = vector.load %arg6[%c0_11, %c0_12] : memref<8x128xf32, #tpu.memory_space<vmem>>, vector<1x128xf32>
    tpu.vector_store %arg6[%c0_11, %c0_12], %16 {strides = array<i32>} : memref<8x128xf32, #tpu.memory_space<vmem>>, vector<1x128xf32>,
    %18 = arith.mulf %12, %12 : vector<64x128xf32>
    %cst_13 = arith.constant dense<0.000000e+00> : vector<128xf32>
    %19 = vector.multi_reduction <add>, %18, %cst_13 [0] : vector<64x128xf32> to vector<128xf32>
    %20 = vector.shape_cast %19 : vector<128xf32> to vector<1x128xf32>
    %c1 = arith.constant 1 : index
    %c0_14 = arith.constant 0 : index
    %21 = vector.load %arg6[%c1, %c0_14] : memref<8x128xf32, #tpu.memory_space<vmem>>, vector<1x128xf32>
    tpu.vector_store %arg6[%c1, %c0_14], %20 {strides = array<i32>} : memref<8x128xf32, #tpu.memory_space<vmem>>, vector<1x128xf32>,
    return
  }
  func.func @transform_0(%arg0: i32) -> (i32, i32) {
    %c0_i32 = arith.constant 0 : i32
    %c0_i32_0 = arith.constant 0 : i32
    return %arg0, %c0_i32 : i32, i32
  }
  func.func @transform_1(%arg0: i32) -> (i32, i32) {
    %c0_i32 = arith.constant 0 : i32
    %c0_i32_0 = arith.constant 0 : i32
    %c0_i32_1 = arith.constant 0 : i32
    return %c0_i32, %c0_i32_0 : i32, i32
  }
  func.func @transform_2(%arg0: i32) -> (i32, i32) {
    %c0_i32 = arith.constant 0 : i32
    %c0_i32_0 = arith.constant 0 : i32
    %c0_i32_1 = arith.constant 0 : i32
    return %c0_i32, %c0_i32_0 : i32, i32
  }
  func.func @transform_3(%arg0: i32) -> (i32, i32) {
    %c0_i32 = arith.constant 0 : i32
    %c0_i32_0 = arith.constant 0 : i32
    %c0_i32_1 = arith.constant 0 : i32
    return %c0_i32, %c0_i32_0 : i32, i32
  }
  func.func @transform_4(%arg0: i32) -> (i32, i32) {
    %c0_i32 = arith.constant 0 : i32
    %c0_i32_0 = arith.constant 0 : i32
    return %arg0, %c0_i32 : i32, i32
  }
  func.func @transform_5(%arg0: i32) -> (i32, i32) {
    %c0_i32 = arith.constant 0 : i32
    %c0_i32_0 = arith.constant 0 : i32
    return %arg0, %c0_i32 : i32, i32
  }
}

module attributes {stable_mosaic.version = 11 : i64} {
  func.func @_mm_stats_kernel(%arg0: i32, %arg1: memref<64x128xbf16, #tpu.memory_space<vmem>>, %arg2: memref<128x128xbf16, #tpu.memory_space<vmem>>, %arg3: memref<64x128xbf16, #tpu.memory_space<vmem>>, %arg4: memref<8x128xf32, #tpu.memory_space<vmem>>) attributes {dimension_semantics = [#tpu.dimension_semantics<parallel>], iteration_bounds = array<i64: 2>, scalar_prefetch = 0 : i64, scratch_operands = 0 : i64, tpu.core_type = #tpu.core_type<tc>, window_params = [{transform_indices = @transform_0, window_bounds = array<i64: 64, 128>}, {pipeline_mode = #tpu.pipeline_mode<synchronous>, transform_indices = @transform_1, window_bounds = array<i64: 128, 128>}, {transform_indices = @transform_2, window_bounds = array<i64: 64, 128>}, {transform_indices = @transform_3, window_bounds = array<i64: 8, 128>}]} {
    %c0 = arith.constant 0 : index
    %c0_0 = arith.constant 0 : index
    %0 = vector.load %arg1[%c0, %c0_0] : memref<64x128xbf16, #tpu.memory_space<vmem>>, vector<64x128xbf16>
    %c0_1 = arith.constant 0 : index
    %c0_2 = arith.constant 0 : index
    %1 = vector.load %arg2[%c0_1, %c0_2] : memref<128x128xbf16, #tpu.memory_space<vmem>>, vector<128x128xbf16>
    %cst = arith.constant dense<0.000000e+00> : vector<64x128xf32>
    %2 = tpu.matmul %0, %1, %cst {dimension_numbers = #tpu.dot_dimension_numbers<[1], [0], [0], [1], [0, 0, 1, 1], [], []>} : vector<64x128xbf16>, vector<128x128xbf16>, vector<64x128xf32> -> vector<64x128xf32>
    %3 = arith.truncf %2 : vector<64x128xf32> to vector<64x128xbf16>
    %c0_3 = arith.constant 0 : index
    %c0_4 = arith.constant 0 : index
    %4 = vector.load %arg3[%c0_3, %c0_4] : memref<64x128xbf16, #tpu.memory_space<vmem>>, vector<64x128xbf16>
    tpu.vector_store %arg3[%c0_3, %c0_4], %3 {strides = array<i32>} : memref<64x128xbf16, #tpu.memory_space<vmem>>, vector<64x128xbf16>,
    %cst_5 = arith.constant dense<0.000000e+00> : vector<128xf32>
    %5 = vector.multi_reduction <add>, %2, %cst_5 [0] : vector<64x128xf32> to vector<128xf32>
    %6 = vector.shape_cast %5 : vector<128xf32> to vector<1x128xf32>
    %c0_6 = arith.constant 0 : index
    %c0_7 = arith.constant 0 : index
    %7 = vector.load %arg4[%c0_6, %c0_7] : memref<8x128xf32, #tpu.memory_space<vmem>>, vector<1x128xf32>
    tpu.vector_store %arg4[%c0_6, %c0_7], %6 {strides = array<i32>} : memref<8x128xf32, #tpu.memory_space<vmem>>, vector<1x128xf32>,
    %8 = arith.mulf %2, %2 : vector<64x128xf32>
    %cst_8 = arith.constant dense<0.000000e+00> : vector<128xf32>
    %9 = vector.multi_reduction <add>, %8, %cst_8 [0] : vector<64x128xf32> to vector<128xf32>
    %10 = vector.shape_cast %9 : vector<128xf32> to vector<1x128xf32>
    %c1 = arith.constant 1 : index
    %c0_9 = arith.constant 0 : index
    %11 = vector.load %arg4[%c1, %c0_9] : memref<8x128xf32, #tpu.memory_space<vmem>>, vector<1x128xf32>
    tpu.vector_store %arg4[%c1, %c0_9], %10 {strides = array<i32>} : memref<8x128xf32, #tpu.memory_space<vmem>>, vector<1x128xf32>,
    return
  }
  func.func @transform_0(%arg0: i32) -> (i32, i32) {
    %c0_i32 = arith.constant 0 : i32
    %c0_i32_0 = arith.constant 0 : i32
    return %arg0, %c0_i32 : i32, i32
  }
  func.func @transform_1(%arg0: i32) -> (i32, i32) {
    %c0_i32 = arith.constant 0 : i32
    %c0_i32_0 = arith.constant 0 : i32
    %c0_i32_1 = arith.constant 0 : i32
    return %c0_i32, %c0_i32_0 : i32, i32
  }
  func.func @transform_2(%arg0: i32) -> (i32, i32) {
    %c0_i32 = arith.constant 0 : i32
    %c0_i32_0 = arith.constant 0 : i32
    return %arg0, %c0_i32 : i32, i32
  }
  func.func @transform_3(%arg0: i32) -> (i32, i32) {
    %c0_i32 = arith.constant 0 : i32
    %c0_i32_0 = arith.constant 0 : i32
    return %arg0, %c0_i32 : i32, i32
  }
}

module attributes {stable_mosaic.version = 11 : i64} {
  func.func @_bn_add_relu_kernel(%arg0: i32, %arg1: memref<64x128xbf16, #tpu.memory_space<vmem>>, %arg2: memref<1x128xf32, #tpu.memory_space<vmem>>, %arg3: memref<1x128xf32, #tpu.memory_space<vmem>>, %arg4: memref<64x128xbf16, #tpu.memory_space<vmem>>, %arg5: memref<1x128xf32, #tpu.memory_space<vmem>>, %arg6: memref<1x128xf32, #tpu.memory_space<vmem>>, %arg7: memref<64x128xf32, #tpu.memory_space<vmem>>) attributes {dimension_semantics = [#tpu.dimension_semantics<parallel>], iteration_bounds = array<i64: 2>, scalar_prefetch = 0 : i64, scratch_operands = 0 : i64, tpu.core_type = #tpu.core_type<tc>, window_params = [{transform_indices = @transform_0, window_bounds = array<i64: 64, 128>}, {pipeline_mode = #tpu.pipeline_mode<synchronous>, transform_indices = @transform_1, window_bounds = array<i64: 1, 128>}, {pipeline_mode = #tpu.pipeline_mode<synchronous>, transform_indices = @transform_2, window_bounds = array<i64: 1, 128>}, {transform_indices = @transform_3, window_bounds = array<i64: 64, 128>}, {pipeline_mode = #tpu.pipeline_mode<synchronous>, transform_indices = @transform_4, window_bounds = array<i64: 1, 128>}, {pipeline_mode = #tpu.pipeline_mode<synchronous>, transform_indices = @transform_5, window_bounds = array<i64: 1, 128>}, {transform_indices = @transform_6, window_bounds = array<i64: 64, 128>}]} {
    %c0 = arith.constant 0 : index
    %c0_0 = arith.constant 0 : index
    %0 = vector.load %arg1[%c0, %c0_0] : memref<64x128xbf16, #tpu.memory_space<vmem>>, vector<64x128xbf16>
    %1 = arith.extf %0 : vector<64x128xbf16> to vector<64x128xf32>
    %c0_1 = arith.constant 0 : index
    %c0_2 = arith.constant 0 : index
    %2 = vector.load %arg2[%c0_1, %c0_2] : memref<1x128xf32, #tpu.memory_space<vmem>>, vector<1x128xf32>
    %3 = vector.broadcast %2 : vector<1x128xf32> to vector<64x128xf32>
    %4 = arith.mulf %1, %3 : vector<64x128xf32>
    %c0_3 = arith.constant 0 : index
    %c0_4 = arith.constant 0 : index
    %5 = vector.load %arg3[%c0_3, %c0_4] : memref<1x128xf32, #tpu.memory_space<vmem>>, vector<1x128xf32>
    %6 = vector.broadcast %5 : vector<1x128xf32> to vector<64x128xf32>
    %7 = arith.addf %4, %6 : vector<64x128xf32>
    %c0_5 = arith.constant 0 : index
    %c0_6 = arith.constant 0 : index
    %8 = vector.load %arg4[%c0_5, %c0_6] : memref<64x128xbf16, #tpu.memory_space<vmem>>, vector<64x128xbf16>
    %9 = arith.extf %8 : vector<64x128xbf16> to vector<64x128xf32>
    %c0_7 = arith.constant 0 : index
    %c0_8 = arith.constant 0 : index
    %10 = vector.load %arg5[%c0_7, %c0_8] : memref<1x128xf32, #tpu.memory_space<vmem>>, vector<1x128xf32>
    %11 = vector.broadcast %10 : vector<1x128xf32> to vector<64x128xf32>
    %12 = arith.mulf %9, %11 : vector<64x128xf32>
    %13 = arith.addf %7, %12 : vector<64x128xf32>
    %c0_9 = arith.constant 0 : index
    %c0_10 = arith.constant 0 : index
    %14 = vector.load %arg6[%c0_9, %c0_10] : memref<1x128xf32, #tpu.memory_space<vmem>>, vector<1x128xf32>
    %15 = vector.broadcast %14 : vector<1x128xf32> to vector<64x128xf32>
    %16 = arith.addf %13, %15 : vector<64x128xf32>
    %cst = arith.constant 0.000000e+00 : f32
    %17 = vector.broadcast %cst : f32 to vector<64x128xf32>
    %18 = arith.maximumf %16, %17 : vector<64x128xf32>
    %c0_11 = arith.constant 0 : index
    %c0_12 = arith.constant 0 : index
    %19 = vector.load %arg7[%c0_11, %c0_12] : memref<64x128xf32, #tpu.memory_space<vmem>>, vector<64x128xf32>
    tpu.vector_store %arg7[%c0_11, %c0_12], %18 {strides = array<i32>} : memref<64x128xf32, #tpu.memory_space<vmem>>, vector<64x128xf32>,
    return
  }
  func.func @transform_0(%arg0: i32) -> (i32, i32) {
    %c0_i32 = arith.constant 0 : i32
    %c0_i32_0 = arith.constant 0 : i32
    return %arg0, %c0_i32 : i32, i32
  }
  func.func @transform_1(%arg0: i32) -> (i32, i32) {
    %c0_i32 = arith.constant 0 : i32
    %c0_i32_0 = arith.constant 0 : i32
    %c0_i32_1 = arith.constant 0 : i32
    return %c0_i32, %c0_i32_0 : i32, i32
  }
  func.func @transform_2(%arg0: i32) -> (i32, i32) {
    %c0_i32 = arith.constant 0 : i32
    %c0_i32_0 = arith.constant 0 : i32
    %c0_i32_1 = arith.constant 0 : i32
    return %c0_i32, %c0_i32_0 : i32, i32
  }
  func.func @transform_3(%arg0: i32) -> (i32, i32) {
    %c0_i32 = arith.constant 0 : i32
    %c0_i32_0 = arith.constant 0 : i32
    return %arg0, %c0_i32 : i32, i32
  }
  func.func @transform_4(%arg0: i32) -> (i32, i32) {
    %c0_i32 = arith.constant 0 : i32
    %c0_i32_0 = arith.constant 0 : i32
    %c0_i32_1 = arith.constant 0 : i32
    return %c0_i32, %c0_i32_0 : i32, i32
  }
  func.func @transform_5(%arg0: i32) -> (i32, i32) {
    %c0_i32 = arith.constant 0 : i32
    %c0_i32_0 = arith.constant 0 : i32
    %c0_i32_1 = arith.constant 0 : i32
    return %c0_i32, %c0_i32_0 : i32, i32
  }
  func.func @transform_6(%arg0: i32) -> (i32, i32) {
    %c0_i32 = arith.constant 0 : i32
    %c0_i32_0 = arith.constant 0 : i32
    return %arg0, %c0_i32 : i32, i32
  }
}

</mosaic_0001>

<bundles_post_ra>
// kernel: bottleneck_forward.5
= control target key start
LH: loop header
LB: loop body
LE: loop exit
PB: predicated region body
PF: predicated region fallthrough
CT: control target
= control target key end

     0   :  { %s1237_s12 = smov 0   ;;  %s1413_s0 = inlined_call_operand.vmem [shape: bf16[512,128], index: 0, kind: input, shape index: {}]   ;;  %s1414_s1 = inlined_call_operand.vmem [shape: bf16[128,128], index: 1, kind: input, shape index: {}]   ;;  %s1415_s2 = inlined_call_operand.vmem [shape: bf16[512,128], index: 2, kind: output, shape index: {0}]   ;;  %s1416_s3 = inlined_call_operand.vmem [shape: f32[16,128], index: 3, kind: output, shape index: {1}]  }
   0x1 LB: > { %s1243_s13 = sadd.s32 4294967295, %s1215_s12   ;;  %p898_p0 = scmp.ge.s32.totalorder %s1215_s12, 1  ;;  %s1215_s12 = sphi %s1237_s12, %s14_s12  }
   0x2   : > { %p141_p1 = scmp.lt.s32.totalorder %s1215_s12, 3 }
   0x4   : > { %p142_p2 = pnand %p898_p0, %p141_p1 }
   0x5   : > { %v1185_v0 = vld [vmem:[%s1414_s1] sm:$0xff] (!%p142_p2)   ;;  %s899_s16 = sshll.u32 (!%p142_p2), %s1243_s13, 5  ;;  %v1186_v1 = vld [vmem:[%s1414_s1 + $0x8] sm:$0xff] (!%p142_p2)   ;;  %v1187_v2 = vld [vmem:[%s1414_s1 + $0x10] sm:$0xff] (!%p142_p2)   ;;  %p181_p4 = scmp.lt.s32.totalorder (!%p142_p2), %s1243_s13, 1 }
   0x6   : > { %145 = sbr.rel (%p142_p2) target bundleno = 330 (0x14a), region = 28  ;;  %p170_p3 = scmp.lt.s32.totalorder (!%p142_p2), %s899_s16, 63  ;;  %1113 = vmatprep.subr.bf16.mxu0 (!%p142_p2), %v1185_v0  ;;  %1161 = vmatprep.subr.bf16.mxu1 (!%p142_p2), %v1185_v0  ;;  %v1188_v3 = vld [vmem:[%s1414_s1 + $0x18] sm:$0xff] (!%p142_p2)   ;;  %v1189_v5 = vld [vmem:[%s1414_s1 + $0x20] sm:$0xff] (!%p142_p2)   ;;  %v1190_v6 = vld [vmem:[%s1414_s1 + $0x28] sm:$0xff] (!%p142_p2)  }
   0x7   : > { %1114 = vmatpush3.bf16.msra.mxu0 (!%p142_p2), %v1185_v0  ;;  %1169 = vmatpush3.bf16.msra.mxu1 (!%p142_p2), %v1185_v0  ;;  %v1191_v8 = vld [vmem:[%s1414_s1 + $0x30] sm:$0xff] (!%p142_p2)   ;;  %v1192_v9 = vld [vmem:[%s1414_s1 + $0x38] sm:$0xff] (!%p142_p2)  }
   0x8   : > { %1115 = vmatprep.subr.bf16.mxu0 (!%p142_p2), %v1186_v1  ;;  %1162 = vmatprep.subr.bf16.mxu1 (!%p142_p2), %v1186_v1 }
   0xb   : > { %1116 = vmatpush3.bf16.msra.mxu0 (!%p142_p2), %v1186_v1  ;;  %1170 = vmatpush3.bf16.msra.mxu1 (!%p142_p2), %v1186_v1 }
   0xc   : > { %1117 = vmatprep.subr.bf16.mxu0 (!%p142_p2), %v1187_v2  ;;  %1163 = vmatprep.subr.bf16.mxu1 (!%p142_p2), %v1187_v2 }
   0xd   : > { %s1418_s16 = smov (!%p170_p3, %s899_s16), 63  ;;  %s1420_s13 = smov (!%p181_p4, %s1243_s13), 1 }
   0xe   : > { %s900_s21 = sshll.u32 %s1418_s16, 2  ;;  %s903_s11 = sshll.u32 %s1420_s13, 3 }
   0xf   : > { %s1265_s24 = scalar_lea.vmem %s1413_s0, %s900_s21  ;;  %1118 = vmatpush3.bf16.msra.mxu0 %v1187_v2  ;;  %1171 = vmatpush3.bf16.msra.mxu1 %v1187_v2  ;;  %s1307_s10 = scalar_lea.vmem %s1415_s2, %s900_s21 }
  0x10   : > { %v1193_v4 = vld [vmem:[%s1265_s24] sm:$0xff]   ;;  %1119 = vmatprep.subr.bf16.mxu0 %v1188_v3  ;;  %1164 = vmatprep.subr.bf16.mxu1 %v1188_v3  ;;  %v1194_v10 = vld [vmem:[%s1265_s24 + $0x8] sm:$0xff]   ;;  %v1195_v12 = vld [vmem:[%s1265_s24 + $0x10] sm:$0xff]   ;;  %s184_s16 = scalar_lea.vmem %s1416_s3, %s903_s11 }
  0x11   : > { %1129 = vmatprep.mubr.bf16.mxu0 %v1193_v4  ;;  %v1201_v7 = vld [vmem:[%s1265_s24 + $0x40] sm:$0xff]   ;;  %v1202_v11 = vld [vmem:[%s1265_s24 + $0x48] sm:$0xff]   ;;  %v1203_v13 = vld [vmem:[%s1265_s24 + $0x50] sm:$0xff]  }
  0x12   : > { %1145 = vmatprep.mubr.bf16.mxu1 %v1201_v7  ;;  %v1196_v14 = vld [vmem:[%s1265_s24 + $0x18] sm:$0xff]   ;;  %v1197_v16 = vld [vmem:[%s1265_s24 + $0x20] sm:$0xff]   ;;  %v1198_v18 = vld [vmem:[%s1265_s24 + $0x28] sm:$0xff]  }
  0x13   : > { %1120 = vmatpush3.bf16.msra.mxu0 %v1188_v3  ;;  %1172 = vmatpush3.bf16.msra.mxu1 %v1188_v3  ;;  %v1204_v15 = vld [vmem:[%s1265_s24 + $0x58] sm:$0xff]   ;;  %v1205_v17 = vld [vmem:[%s1265_s24 + $0x60] sm:$0xff]   ;;  %v1206_v19 = vld [vmem:[%s1265_s24 + $0x68] sm:$0xff]  }
  0x14   : > { %1121 = vmatprep.subr.bf16.mxu0 %v1189_v5  ;;  %1165 = vmatprep.subr.bf16.mxu1 %v1189_v5  ;;  %v1199_v20 = vld [vmem:[%s1265_s24 + $0x30] sm:$0xff]   ;;  %v1200_v22 = vld [vmem:[%s1265_s24 + $0x38] sm:$0xff]  }
  0x15   : > { %v1207_v21 = vld [vmem:[%s1265_s24 + $0x70] sm:$0xff]   ;;  %v1208_v23 = vld [vmem:[%s1265_s24 + $0x78] sm:$0xff]  }
  0x17   : > { %1122 = vmatpush3.bf16.msra.mxu0 %v1189_v5  ;;  %1173 = vmatpush3.bf16.msra.mxu1 %v1189_v5 }
  0x18   : > { %1123 = vmatprep.subr.bf16.mxu0 %v1190_v6  ;;  %1166 = vmatprep.subr.bf16.mxu1 %v1190_v6 }
  0x1b   : > { %1124 = vmatpush3.bf16.msra.mxu0 %v1190_v6  ;;  %1174 = vmatpush3.bf16.msra.mxu1 %v1190_v6 }
  0x1c   : > { %1125 = vmatprep.subr.bf16.mxu0 %v1191_v8  ;;  %1167 = vmatprep.subr.bf16.mxu1 %v1191_v8 }
  0x1f   : > { %1126 = vmatpush3.bf16.msra.mxu0 %v1191_v8  ;;  %1175 = vmatpush3.bf16.msra.mxu1 %v1191_v8 }
  0x20   : > { %1127 = vmatprep.subr.bf16.mxu0 %v1192_v9  ;;  %1168 = vmatprep.subr.bf16.mxu1 %v1192_v9 }
  0x23   : > { %1128 = vmatpush3.bf16.msra.mxu0 %v1192_v9  ;;  %1176 = vmatpush3.bf16.msra.mxu1 %v1192_v9 }
  0x26   : > { %1130 = vmatmul.mubr.bf16.vlgmr.msra.gmra.mrb[0].mxu0 %v1194_v10  ;;  %1146 = vmatmul.mubr.bf16.vlgmr.msra.gmra.mrb[0].mxu1 %v1202_v11 }
  0x27   : > { %1133 = vmatprep.mubr.bf16.mxu0 %v1195_v12  ;;  %1149 = vmatprep.mubr.bf16.mxu1 %v1203_v13 }
  0x2e   : > { %1134 = vmatmul.mubr.bf16.gmra.mrb[4].mxu0 %v1196_v14  ;;  %1150 = vmatmul.mubr.bf16.gmra.mrb[4].mxu1 %v1204_v15 }
  0x2f   : > { %1137 = vmatprep.mubr.bf16.mxu0 %v1197_v16  ;;  %1153 = vmatprep.mubr.bf16.mxu1 %v1205_v17 }
  0x36   : > { %1138 = vmatmul.mubr.bf16.gmra.mrb[8].mxu0 %v1198_v18  ;;  %1154 = vmatmul.mubr.bf16.gmra.mrb[8].mxu1 %v1206_v19 }
  0x37   : > { %1141 = vmatprep.mubr.bf16.mxu0 %v1199_v20  ;;  %1157 = vmatprep.mubr.bf16.mxu1 %v1207_v21 }
  0x3e   : > { %1142 = vmatmul.mubr.bf16.gmra.mrb[12].mxu0 %v1200_v22  ;;  %1158 = vmatmul.mubr.bf16.gmra.mrb[12].mxu1 %v1208_v23 }
  0xf9   : > { %v1131_v24 = vpop.f32.mrb[0].mxu0  ;;  %v1298_v25 = vpop.f32.mrb[0].mxu1 }
  0xfa   : > { %v412_v26 = vpop.f32.mrb[1].mxu0  ;;  %v1300_v27 = vpop.f32.mrb[1].mxu1  ;;  %v739_v39 = vmul.f32 %v1131_v24, %v1131_v24 }
  0xfb   : > { %v1132_v28 = vpop.f32.mrb[2].mxu0  ;;  %v1309_v29 = vpop.f32.mrb[2].mxu1  ;;  %v737_v30 = vmul.f32 %v412_v26, %v412_v26 }
  0xfc   : > { %v1002_v31 = vpack.c.bf16 %v1132_v28, %v1131_v24  ;;  %v415_v32 = vpop.f32.mrb[3].mxu0  ;;  %v1042_v33 = vpack.c.bf16 %v1309_v29, %v1298_v25  ;;  %v1313_v34 = vpop.f32.mrb[3].mxu1  ;;  %v740_v42 = vmul.f32 %v1132_v28, %v1132_v28 }
  0xfd   : > { %v997_v35 = vpack.c.bf16 %v415_v32, %v412_v26  ;;  %v699_v36 = vadd.f32 %v415_v32, %v412_v26  ;;  %v738_v37 = vmul.f32 %v415_v32, %v415_v32  ;;  %v1037_v38 = vpack.c.bf16 %v1313_v34, %v1300_v27 }
  0xfe   : > { %1074 = vst [vmem:[%s1307_s10 + $0x8] sm:$0xff] %v1002_v31   ;;  %1082 = vst [vmem:[%s1307_s10 + $0x48] sm:$0xff] %v1042_v33  }
  0xff   : > { %998 = vst [vmem:[%s1307_s10] sm:$0xff] %v997_v35   ;;  %v700_v40 = vadd.f32 %v1131_v24, %v699_v36  ;;  %v769_v41 = vadd.f32 %v738_v37, %v737_v30  ;;  %1081 = vst [vmem:[%s1307_s10 + $0x40] sm:$0xff] %v1037_v38  }
 0x101   : > { %v770_v43 = vadd.f32 %v769_v41, %v739_v39  ;;  %v1135_v44 = vpop.f32.mrb[4].mxu0  ;;  %v701_v45 = vadd.f32 %v1132_v28, %v700_v40  ;;  %v1321_v46 = vpop.f32.mrb[4].mxu1 }
 0x102   : > { %v428_v47 = vpop.f32.mrb[5].mxu0  ;;  %v1323_v48 = vpop.f32.mrb[5].mxu1  ;;  %v743_v63 = vmul.f32 %v1135_v44, %v1135_v44 }
 0x103   : > { %v702_v49 = vadd.f32 %v701_v45, %v428_v47  ;;  %v741_v50 = vmul.f32 %v428_v47, %v428_v47  ;;  %v771_v51 = vadd.f32 %v770_v43, %v740_v42  ;;  %v1136_v52 = vpop.f32.mrb[6].mxu0  ;;  %v1325_v53 = vpop.f32.mrb[6].mxu1 }
 0x104   : > { %v1012_v54 = vpack.c.bf16 %v1136_v52, %v1135_v44  ;;  %v431_v55 = vpop.f32.mrb[7].mxu0  ;;  %v1052_v56 = vpack.c.bf16 %v1325_v53, %v1321_v46  ;;  %v1329_v57 = vpop.f32.mrb[7].mxu1  ;;  %v744_v2 = vmul.f32 %v1136_v52, %v1136_v52 }
 0x105   : > { %v772_v58 = vadd.f32 %v771_v51, %v741_v50  ;;  %v1007_v59 = vpack.c.bf16 %v431_v55, %v428_v47  ;;  %v703_v60 = vadd.f32 %v702_v49, %v431_v55  ;;  %v742_v61 = vmul.f32 %v431_v55, %v431_v55 }
 0x106   : > { %1076 = vst [vmem:[%s1307_s10 + $0x18] sm:$0xff] %v1012_v54   ;;  %1084 = vst [vmem:[%s1307_s10 + $0x58] sm:$0xff] %v1052_v56   ;;  %v1047_v62 = vpack.c.bf16 %v1329_v57, %v1323_v48 }
 0x107   : > { %1075 = vst [vmem:[%s1307_s10 + $0x10] sm:$0xff] %v1007_v59   ;;  %v704_v0 = vadd.f32 %v1135_v44, %v703_v60  ;;  %v773_v1 = vadd.f32 %v772_v58, %v742_v61  ;;  %v753_v61 = vmul.f32 %v1300_v27, %v1300_v27 }
 0x108   : > { %1083 = vst [vmem:[%s1307_s10 + $0x50] sm:$0xff] %v1047_v62  }
 0x109   : > { %v774_v3 = vadd.f32 %v773_v1, %v743_v63  ;;  %v1139_v4 = vpop.f32.mrb[8].mxu0  ;;  %v705_v5 = vadd.f32 %v1136_v52, %v704_v0  ;;  %v1337_v6 = vpop.f32.mrb[8].mxu1 }
 0x10a   : > { %v444_v7 = vpop.f32.mrb[9].mxu0  ;;  %v1339_v8 = vpop.f32.mrb[9].mxu1  ;;  %v747_v23 = vmul.f32 %v1139_v4, %v1139_v4 }
 0x10b   : > { %v706_v9 = vadd.f32 %v705_v5, %v444_v7  ;;  %v745_v10 = vmul.f32 %v444_v7, %v444_v7  ;;  %v775_v11 = vadd.f32 %v774_v3, %v744_v2  ;;  %v1140_v12 = vpop.f32.mrb[10].mxu0  ;;  %v1341_v13 = vpop.f32.mrb[10].mxu1  ;;  %v754_v2 = vmul.f32 %v1313_v34, %v1313_v34 }
 0x10c   : > { %v1022_v14 = vpack.c.bf16 %v1140_v12, %v1139_v4  ;;  %v447_v15 = vpop.f32.mrb[11].mxu0  ;;  %v1062_v16 = vpack.c.bf16 %v1341_v13, %v1337_v6  ;;  %v1345_v17 = vpop.f32.mrb[11].mxu1  ;;  %v748_v28 = vmul.f32 %v1140_v12, %v1140_v12  ;;  %v755_v3 = vmul.f32 %v1298_v25, %v1298_v25 }
 0x10d   : > { %v776_v18 = vadd.f32 %v775_v11, %v745_v10  ;;  %v1017_v19 = vpack.c.bf16 %v447_v15, %v444_v7  ;;  %v707_v20 = vadd.f32 %v706_v9, %v447_v15  ;;  %v746_v21 = vmul.f32 %v447_v15, %v447_v15 }
 0x10e   : > { %1078 = vst [vmem:[%s1307_s10 + $0x28] sm:$0xff] %v1022_v14   ;;  %1086 = vst [vmem:[%s1307_s10 + $0x68] sm:$0xff] %v1062_v16   ;;  %v1057_v22 = vpack.c.bf16 %v1345_v17, %v1339_v8  ;;  %v756_v7 = vmul.f32 %v1309_v29, %v1309_v29  ;;  %v758_v15 = vmul.f32 %v1329_v57, %v1329_v57 }
 0x10f   : > { %1077 = vst [vmem:[%s1307_s10 + $0x20] sm:$0xff] %v1017_v19   ;;  %v708_v24 = vadd.f32 %v1139_v4, %v707_v20  ;;  %v777_v26 = vadd.f32 %v776_v18, %v746_v21 }
 0x110   : > { %1085 = vst [vmem:[%s1307_s10 + $0x60] sm:$0xff] %v1057_v22  }
 0x111   : > { %v778_v30 = vadd.f32 %v777_v26, %v747_v23  ;;  %v1143_v31 = vpop.f32.mrb[12].mxu0  ;;  %v709_v32 = vadd.f32 %v1140_v12, %v708_v24  ;;  %v1353_v33 = vpop.f32.mrb[12].mxu1  ;;  %v762_v24 = vmul.f32 %v1345_v17, %v1345_v17 }
 0x112   : > { %v460_v35 = vpop.f32.mrb[13].mxu0  ;;  %v524_v36 = vpop.f32.mrb[13].mxu1  ;;  %v751_v54 = vmul.f32 %v1143_v31, %v1143_v31 }
 0x113   : > { %v710_v37 = vadd.f32 %v709_v32, %v460_v35  ;;  %v749_v38 = vmul.f32 %v460_v35, %v460_v35  ;;  %v779_v39 = vadd.f32 %v778_v30, %v748_v28  ;;  %v1144_v40 = vpop.f32.mrb[14].mxu0  ;;  %v1355_v41 = vpop.f32.mrb[14].mxu1 }
 0x114   : > { %v1032_v42 = vpack.c.bf16 %v1144_v40, %v1143_v31  ;;  %v463_v43 = vpop.f32.mrb[15].mxu0  ;;  %v1072_v44 = vpack.c.bf16 %v1355_v41, %v1353_v33  ;;  %v527_v45 = vpop.f32.mrb[15].mxu1  ;;  %v752_v58 = vmul.f32 %v1144_v40, %v1144_v40 }
 0x115   : > { %v780_v47 = vadd.f32 %v779_v39, %v749_v38  ;;  %v1027_v49 = vpack.c.bf16 %v463_v43, %v460_v35  ;;  %v711_v50 = vadd.f32 %v710_v37, %v463_v43  ;;  %v750_v51 = vmul.f32 %v463_v43, %v463_v43 }
 0x116   : > { %1080 = vst [vmem:[%s1307_s10 + $0x38] sm:$0xff] %v1032_v42   ;;  %1088 = vst [vmem:[%s1307_s10 + $0x78] sm:$0xff] %v1072_v44   ;;  %v1067_v52 = vpack.c.bf16 %v527_v45, %v524_v36  ;;  %v767_v39 = vmul.f32 %v1353_v33, %v1353_v33  ;;  %v768_v42 = vmul.f32 %v1355_v41, %v1355_v41 }
 0x117   : > { %1079 = vst [vmem:[%s1307_s10 + $0x30] sm:$0xff] %v1027_v49   ;;  %v712_v55 = vadd.f32 %v1143_v31, %v711_v50  ;;  %v781_v56 = vadd.f32 %v780_v47, %v750_v51  ;;  %v765_v31 = vmul.f32 %v524_v36, %v524_v36 }
 0x118   : > { %1087 = vst [vmem:[%s1307_s10 + $0x70] sm:$0xff] %v1067_v52  }
 0x119   : > { %v782_v59 = vadd.f32 %v781_v56, %v751_v54  ;;  %v713_v60 = vadd.f32 %v1144_v40, %v712_v55 }
 0x11b   : > { %v714_v62 = vadd.f32 %v713_v60, %v1300_v27  ;;  %v783_v63 = vadd.f32 %v782_v59, %v752_v58  ;;  %v757_v27 = vmul.f32 %v1323_v48, %v1323_v48 }
 0x11d   : > { %v784_v0 = vadd.f32 %v783_v63, %v753_v61  ;;  %v715_v1 = vadd.f32 %v714_v62, %v1313_v34 }
 0x11f   : > { %v716_v4 = vadd.f32 %v1298_v25, %v715_v1  ;;  %v785_v5 = vadd.f32 %v784_v0, %v754_v2  ;;  %v759_v25 = vmul.f32 %v1321_v46, %v1321_v46 }
 0x121   : > { %v786_v9 = vadd.f32 %v785_v5, %v755_v3  ;;  %v717_v10 = vadd.f32 %v1309_v29, %v716_v4  ;;  %v760_v29 = vmul.f32 %v1325_v53, %v1325_v53 }
 0x123   : > { %v718_v11 = vadd.f32 %v717_v10, %v1323_v48  ;;  %v787_v12 = vadd.f32 %v786_v9, %v756_v7  ;;  %v761_v48 = vmul.f32 %v1339_v8, %v1339_v8 }
 0x125   : > { %v788_v14 = vadd.f32 %v787_v12, %v757_v27  ;;  %v719_v34 = vadd.f32 %v718_v11, %v1329_v57 }
 0x127   : > { %v720_v16 = vadd.f32 %v1321_v46, %v719_v34  ;;  %v789_v18 = vadd.f32 %v788_v14, %v758_v15  ;;  %v763_v46 = vmul.f32 %v1337_v6, %v1337_v6 }
 0x129   : > { %v790_v19 = vadd.f32 %v789_v18, %v759_v25  ;;  %v721_v20 = vadd.f32 %v1325_v53, %v720_v16  ;;  %v764_v53 = vmul.f32 %v1341_v13, %v1341_v13 }
 0x12b   : > { %v722_v21 = vadd.f32 %v721_v20, %v1339_v8  ;;  %v791_v22 = vadd.f32 %v790_v19, %v760_v29 }
 0x12d   : > { %v792_v23 = vadd.f32 %v791_v22, %v761_v48  ;;  %v723_v57 = vadd.f32 %v722_v21, %v1345_v17  ;;  %v766_v17 = vmul.f32 %v527_v45, %v527_v45 }
 0x12f   : > { %v724_v26 = vadd.f32 %v1337_v6, %v723_v57  ;;  %v793_v28 = vadd.f32 %v792_v23, %v762_v24 }
 0x131   : > { %v794_v30 = vadd.f32 %v793_v28, %v763_v46  ;;  %v725_v8 = vadd.f32 %v1341_v13, %v724_v26 }
 0x133   : > { %v726_v32 = vadd.f32 %v725_v8, %v524_v36  ;;  %v795_v35 = vadd.f32 %v794_v30, %v764_v53 }
 0x135   : > { %v796_v37 = vadd.f32 %v795_v35, %v765_v31  ;;  %v727_v38 = vadd.f32 %v726_v32, %v527_v45 }
 0x137   : > { %v728_v40 = vadd.f32 %v1353_v33, %v727_v38  ;;  %v797_v6 = vadd.f32 %v796_v37, %v766_v17 }
 0x139   : > { %v729_v43 = vadd.f32 %v1355_v41, %v728_v40  ;;  %v798_v13 = vadd.f32 %v797_v6, %v767_v39 }
 0x13b   : > { %v730_v44 = vrot.slane %v729_v43, 4  ;;  %v799_v47 = vadd.f32 %v798_v13, %v768_v42 }
 0x13d   : > { %v731_v36 = vadd.f32 %v730_v44, %v729_v43  ;;  %v800_v49 = vrot.slane %v799_v47, 4 }
 0x13f   : > { %v732_v50 = vrot.slane %v731_v36, 2  ;;  %v801_v45 = vadd.f32 %v800_v49, %v799_v47 }
 0x141   : > { %v733_v51 = vadd.f32 %v732_v50, %v731_v36  ;;  %v802_v52 = vrot.slane %v801_v45, 2 }
 0x143   : > { %v734_v54 = vrot.slane %v733_v51, 1  ;;  %v803_v33 = vadd.f32 %v802_v52, %v801_v45 }
 0x145   : > { %v735_v55 = vadd.f32 %v734_v54, %v733_v51  ;;  %v804_v56 = vrot.slane %v803_v33, 1 }
 0x147   : > { %736 = vst [vmem:[%s184_s16] sm:$0x1] %v735_v55  ;;  %v805_v41 = vadd.f32 %v804_v56, %v803_v33 }
 0x149   : > { %806 = vst [vmem:[%s184_s16 + $0x1] sm:$0x1] %v805_v41 }
 0x14a PF: > { %s14_s12 = sadd.s32 1, %s1215_s12  }
 0x14b   : > { %p11_p5 = scmp.ge.s32.totalorder %s14_s12, 4  }
 0x14d   :  { %13 = sbr.rel (!%p11_p5) target bundleno = 1 (0x1), region = 70 }

// kernel: bottleneck_forward.8
= control target key start
LH: loop header
LB: loop body
LE: loop exit
PB: predicated region body
PF: predicated region fallthrough
CT: control target
= control target key end

     0   :  { %s776_s18 = smov 0   ;;  %s838_s0 = inlined_call_operand.vmem [shape: bf16[128,128], index: 0, kind: input, shape index: {}]   ;;  %s839_s1 = inlined_call_operand.vmem [shape: f32[1,128], index: 1, kind: input, shape index: {}]   ;;  %s840_s2 = inlined_call_operand.vmem [shape: f32[1,128], index: 2, kind: input, shape index: {}]   ;;  %s841_s3 = inlined_call_operand.vmem [shape: bf16[128,128], index: 3, kind: input, shape index: {}]   ;;  %s842_s4 = inlined_call_operand.vmem [shape: bf16[128,128], index: 4, kind: output, shape index: {0}]   ;;  %s843_s5 = inlined_call_operand.vmem [shape: f32[16,128], index: 5, kind: output, shape index: {1}]  }
   0x1 LB: > { %s782_s19 = sadd.s32 4294967295, %s744_s18   ;;  %p594_p0 = scmp.ge.s32.totalorder %s744_s18, 1  ;;  %s744_s18 = sphi %s776_s18, %s16_s18  }
   0x2   : > { %p191_p1 = scmp.lt.s32.totalorder %s744_s18, 3 }
   0x4   : > { %p192_p2 = pnand %p594_p0, %p191_p1 }
   0x5   : > { %v730_v0 = vld [vmem:[%s841_s3] sm:$0xff] (!%p192_p2)   ;;  %s595_s22 = sshll.u32 (!%p192_p2), %s782_s19, 3  ;;  %v731_v1 = vld [vmem:[%s841_s3 + $0x8] sm:$0xff] (!%p192_p2)   ;;  %v732_v2 = vld [vmem:[%s841_s3 + $0x10] sm:$0xff] (!%p192_p2)   ;;  %p235_p4 = scmp.lt.s32.totalorder (!%p192_p2), %s782_s19, 1 }
   0x6   : > { %195 = sbr.rel (%p192_p2) target bundleno = 283 (0x11b), region = 36  ;;  %p224_p3 = scmp.lt.s32.totalorder (!%p192_p2), %s595_s22, 15  ;;  %682 = vmatprep.subr.bf16.mxu0 (!%p192_p2), %v730_v0  ;;  %706 = vmatprep.subr.bf16.mxu1 (!%p192_p2), %v730_v0  ;;  %v733_v3 = vld [vmem:[%s841_s3 + $0x18] sm:$0xff] (!%p192_p2)   ;;  %v600_v5 = vld [vmem:[%s839_s1] ss:$0 sm:$0xff] (!%p192_p2)  ;;  %v735_v29 = vld [vmem:[%s841_s3 + $0x28] sm:$0xff] (!%p192_p2)  }
   0x7   : > { %683 = vmatpush3.bf16.msra.mxu0 (!%p192_p2), %v730_v0  ;;  %714 = vmatpush3.bf16.msra.mxu1 (!%p192_p2), %v730_v0  ;;  %v601_v9 = vld [vmem:[%s840_s2] ss:$0 sm:$0xff] (!%p192_p2)  ;;  %v736_v38 = vld [vmem:[%s841_s3 + $0x30] sm:$0xff] (!%p192_p2)   ;;  %v737_v43 = vld [vmem:[%s841_s3 + $0x38] sm:$0xff] (!%p192_p2)  }
   0x8   : > { %684 = vmatprep.subr.bf16.mxu0 (!%p192_p2), %v731_v1  ;;  %707 = vmatprep.subr.bf16.mxu1 (!%p192_p2), %v731_v1  ;;  %v734_v16 = vld [vmem:[%s841_s3 + $0x20] sm:$0xff] (!%p192_p2)  }
   0xb   : > { %685 = vmatpush3.bf16.msra.mxu0 (!%p192_p2), %v731_v1  ;;  %715 = vmatpush3.bf16.msra.mxu1 (!%p192_p2), %v731_v1 }
   0xc   : > { %686 = vmatprep.subr.bf16.mxu0 (!%p192_p2), %v732_v2  ;;  %708 = vmatprep.subr.bf16.mxu1 (!%p192_p2), %v732_v2 }
   0xd   : > { %s845_s22 = smov (!%p224_p3, %s595_s22), 15  ;;  %s847_s19 = smov (!%p235_p4, %s782_s19), 1 }
   0xe   : > { %s596_s27 = sshll.u32 %s845_s22, 2  ;;  %s599_s22 = sshll.u32 %s847_s19, 3 }
   0xf   : > { %s227_s30 = scalar_lea.vmem %s838_s0, %s596_s27  ;;  %687 = vmatpush3.bf16.msra.mxu0 %v732_v2  ;;  %716 = vmatpush3.bf16.msra.mxu1 %v732_v2  ;;  %s233_s25 = scalar_lea.vmem %s842_s4, %s596_s27 }
  0x10   : > { %v629_v4 = vld [vmem:[%s227_s30] sm:$0xff]   ;;  %v665_v8 = vld [vmem:[%s227_s30 + $0x10] sm:$0xff]   ;;  %v664_v10 = vld [vmem:[%s227_s30 + $0x8] sm:$0xff]   ;;  %688 = vmatprep.subr.bf16.mxu0 %v733_v3  ;;  %709 = vmatprep.subr.bf16.mxu1 %v733_v3  ;;  %s238_s28 = scalar_lea.vmem %s843_s5, %s599_s22 }
  0x11   : > { %v630_v6 = vunpack.c.l.bf16 %v629_v4  ;;  %v631_v7 = vunpack.c.h.bf16 %v629_v4  ;;  %v638_v11 = vunpack.c.l.bf16 %v665_v8  ;;  %v639_v12 = vunpack.c.h.bf16 %v665_v8  ;;  %v666_v15 = vld [vmem:[%s227_s30 + $0x18] sm:$0xff]  }
  0x12   : > { %v634_v20 = vunpack.c.l.bf16 %v664_v10  ;;  %v635_v22 = vunpack.c.h.bf16 %v664_v10  ;;  %v642_v24 = vunpack.c.l.bf16 %v666_v15  ;;  %v643_v25 = vunpack.c.h.bf16 %v666_v15 }
  0x13   : > { %v263_v13 = vmul.f32 %v630_v6, %v600_v5  ;;  %v264_v14 = vmul.f32 %v631_v7, %v600_v5  ;;  %v267_v17 = vmul.f32 %v638_v11, %v600_v5  ;;  %v268_v21 = vmul.f32 %v639_v12, %v600_v5  ;;  %689 = vmatpush3.bf16.msra.mxu0 %v733_v3 }
  0x14   : > { %717 = vmatpush3.bf16.msra.mxu1 %v733_v3  ;;  %690 = vmatprep.subr.bf16.mxu0 %v734_v16  ;;  %v265_v33 = vmul.f32 %v634_v20, %v600_v5  ;;  %v266_v34 = vmul.f32 %v635_v22, %v600_v5  ;;  %v269_v35 = vmul.f32 %v642_v24, %v600_v5 }
  0x15   : > { %v278_v18 = vadd.f32 %v601_v9, %v263_v13  ;;  %v279_v19 = vadd.f32 %v601_v9, %v264_v14  ;;  %v282_v23 = vadd.f32 %v601_v9, %v267_v17  ;;  %v283_v28 = vadd.f32 %v601_v9, %v268_v21  ;;  %710 = vmatprep.subr.bf16.mxu1 %v734_v16 }
  0x16   : > { %v270_v36 = vmul.f32 %v643_v25, %v600_v5  ;;  %v280_v39 = vadd.f32 %v601_v9, %v265_v33  ;;  %v281_v40 = vadd.f32 %v601_v9, %v266_v34  ;;  %v284_v41 = vadd.f32 %v601_v9, %v269_v35 }
  0x17   : > { %v286_v26 = vmax.f32 %v278_v18, 0.0  ;;  %v287_v27 = vmax.f32 %v279_v19, 0.0  ;;  %v290_v30 = vmax.f32 %v282_v23, 0.0  ;;  %v291_v32 = vmax.f32 %v283_v28, 0.0  ;;  %691 = vmatpush3.bf16.msra.mxu0 %v734_v16 }
  0x18   : > { %718 = vmatpush3.bf16.msra.mxu1 %v734_v16  ;;  %692 = vmatprep.subr.bf16.mxu0 %v735_v29  ;;  %v285_v42 = vadd.f32 %v601_v9, %v270_v36  ;;  %v288_v44 = vmax.f32 %v280_v39, 0.0  ;;  %v289_v45 = vmax.f32 %v281_v40, 0.0  ;;  %v292_v46 = vmax.f32 %v284_v41, 0.0 }
  0x19   : > { %v294_v31 = vpack.c.bf16 %v287_v27, %v286_v26  ;;  %v296_v37 = vpack.c.bf16 %v291_v32, %v290_v30  ;;  %711 = vmatprep.subr.bf16.mxu1 %v735_v29 }
  0x1a   : > { %v293_v47 = vmax.f32 %v285_v42, 0.0  ;;  %v295_v48 = vpack.c.bf16 %v289_v45, %v288_v44 }
  0x1b   : > { %698 = vmatprep.mubr.bf16.mxu0 %v294_v31  ;;  %702 = vmatprep.mubr.bf16.mxu1 %v296_v37 }
  0x1c   : > { %693 = vmatpush3.bf16.msra.mxu0 %v735_v29  ;;  %719 = vmatpush3.bf16.msra.mxu1 %v735_v29  ;;  %v297_v49 = vpack.c.bf16 %v293_v47, %v292_v46 }
  0x1d   : > { %694 = vmatprep.subr.bf16.mxu0 %v736_v38  ;;  %712 = vmatprep.subr.bf16.mxu1 %v736_v38 }
  0x20   : > { %695 = vmatpush3.bf16.msra.mxu0 %v736_v38  ;;  %720 = vmatpush3.bf16.msra.mxu1 %v736_v38 }
  0x21   : > { %696 = vmatprep.subr.bf16.mxu0 %v737_v43  ;;  %713 = vmatprep.subr.bf16.mxu1 %v737_v43 }
  0x24   : > { %697 = vmatpush3.bf16.msra.mxu0 %v737_v43  ;;  %721 = vmatpush3.bf16.msra.mxu1 %v737_v43 }
  0x27   : > { %699 = vmatmul.mubr.bf16.vlgmr.msra.gmra.mrb[0].mxu0 %v295_v48  ;;  %703 = vmatmul.mubr.bf16.vlgmr.msra.gmra.mrb[0].mxu1 %v297_v49 }
  0xfa   : > { %v700_v50 = vpop.f32.mrb[0].mxu0  ;;  %v704_v51 = vpop.f32.mrb[0].mxu1 }
  0xfb   : > { %v396_v52 = vpop.f32.mrb[1].mxu0  ;;  %v412_v53 = vpop.f32.mrb[1].mxu1  ;;  %v483_v1 = vmul.f32 %v700_v50, %v700_v50  ;;  %v487_v13 = vmul.f32 %v704_v51, %v704_v51 }
  0xfc   : > { %v701_v54 = vpop.f32.mrb[2].mxu0  ;;  %v705_v55 = vpop.f32.mrb[2].mxu1  ;;  %v481_v56 = vmul.f32 %v396_v52, %v396_v52  ;;  %v485_v7 = vmul.f32 %v412_v53, %v412_v53 }
  0xfd   : > { %v652_v57 = vpack.c.bf16 %v701_v54, %v700_v50  ;;  %v399_v58 = vpop.f32.mrb[3].mxu0  ;;  %v662_v59 = vpack.c.bf16 %v705_v55, %v704_v51  ;;  %v415_v60 = vpop.f32.mrb[3].mxu1  ;;  %v484_v4 = vmul.f32 %v701_v54, %v701_v54  ;;  %v488_v16 = vmul.f32 %v705_v55, %v705_v55 }
  0xfe   : > { %v647_v61 = vpack.c.bf16 %v399_v58, %v396_v52  ;;  %v467_v62 = vadd.f32 %v399_v58, %v396_v52  ;;  %v482_v63 = vmul.f32 %v399_v58, %v399_v58  ;;  %v657_v0 = vpack.c.bf16 %v415_v60, %v412_v53 }
  0xff   : > { %667 = vst [vmem:[%s233_s25 + $0x8] sm:$0xff] %v652_v57   ;;  %669 = vst [vmem:[%s233_s25 + $0x18] sm:$0xff] %v662_v59   ;;  %v486_v12 = vmul.f32 %v415_v60, %v415_v60 }
 0x100   : > { %648 = vst [vmem:[%s233_s25] sm:$0xff] %v647_v61   ;;  %v468_v2 = vadd.f32 %v700_v50, %v467_v62  ;;  %v489_v3 = vadd.f32 %v482_v63, %v481_v56  ;;  %668 = vst [vmem:[%s233_s25 + $0x10] sm:$0xff] %v657_v0  }
 0x102   : > { %v490_v5 = vadd.f32 %v489_v3, %v483_v1  ;;  %v469_v6 = vadd.f32 %v701_v54, %v468_v2 }
 0x104   : > { %v470_v8 = vadd.f32 %v469_v6, %v412_v53  ;;  %v491_v9 = vadd.f32 %v490_v5, %v484_v4 }
 0x106   : > { %v492_v10 = vadd.f32 %v491_v9, %v485_v7  ;;  %v471_v11 = vadd.f32 %v470_v8, %v415_v60 }
 0x108   : > { %v472_v14 = vadd.f32 %v704_v51, %v471_v11  ;;  %v493_v15 = vadd.f32 %v492_v10, %v486_v12 }
 0x10a   : > { %v473_v17 = vadd.f32 %v705_v55, %v472_v14  ;;  %v494_v18 = vadd.f32 %v493_v15, %v487_v13 }
 0x10c   : > { %v474_v19 = vrot.slane %v473_v17, 4  ;;  %v495_v20 = vadd.f32 %v494_v18, %v488_v16 }
 0x10e   : > { %v475_v21 = vadd.f32 %v474_v19, %v473_v17  ;;  %v496_v22 = vrot.slane %v495_v20, 4 }
 0x110   : > { %v476_v23 = vrot.slane %v475_v21, 2  ;;  %v497_v24 = vadd.f32 %v496_v22, %v495_v20 }
 0x112   : > { %v477_v25 = vadd.f32 %v476_v23, %v475_v21  ;;  %v498_v26 = vrot.slane %v497_v24, 2 }
 0x114   : > { %v478_v27 = vrot.slane %v477_v25, 1  ;;  %v499_v28 = vadd.f32 %v498_v26, %v497_v24 }
 0x116   : > { %v479_v29 = vadd.f32 %v478_v27, %v477_v25  ;;  %v500_v30 = vrot.slane %v499_v28, 1 }
 0x118   : > { %480 = vst [vmem:[%s238_s28] sm:$0x1] %v479_v29  ;;  %v501_v31 = vadd.f32 %v500_v30, %v499_v28 }
 0x11a   : > { %502 = vst [vmem:[%s238_s28 + $0x1] sm:$0x1] %v501_v31 }
 0x11b PF: > { %s16_s18 = sadd.s32 1, %s744_s18  }
 0x11c   : > { %p13_p5 = scmp.ge.s32.totalorder %s16_s18, 4  }
 0x11e   :  { %15 = sbr.rel (!%p13_p5) target bundleno = 1 (0x1), region = 78 }

// kernel: bottleneck_forward.6
= control target key start
LH: loop header
LB: loop body
LE: loop exit
PB: predicated region body
PF: predicated region fallthrough
CT: control target
= control target key end

     0   :  { %s2234_s12 = smov 0   ;;  %s2558_s0 = inlined_call_operand.vmem [shape: bf16[2,144,384], index: 0, kind: input, shape index: {}]   ;;  %s2559_s1 = inlined_call_operand.vmem [shape: bf16[3,384,128], index: 1, kind: input, shape index: {}]   ;;  %s2560_s2 = inlined_call_operand.vmem [shape: bf16[128,128], index: 2, kind: output, shape index: {0}]   ;;  %s2561_s3 = inlined_call_operand.vmem [shape: f32[16,128], index: 3, kind: output, shape index: {1}]  }
   0x1 LB: > { %s2240_s13 = sadd.s32 4294967295, %s2212_s12   ;;  %p1567_p0 = scmp.ge.s32.totalorder %s2212_s12, 1  ;;  %s2212_s12 = sphi %s2234_s12, %s14_s12  }
   0x2   : > { %p140_p1 = scmp.lt.s32.totalorder %s2212_s12, 3 }
   0x4   : > { %p141_p2 = pnand %p1567_p0, %p140_p1 }
   0x5   : > { %v2094_v0 = vld [vmem:[%s2559_s1 + $0x100] sm:$0xff] (!%p141_p2)   ;;  %v2097_v3 = vld [vmem:[%s2559_s1 + $0x108] sm:$0xff] (!%p141_p2)   ;;  %v2100_v6 = vld [vmem:[%s2559_s1 + $0x110] sm:$0xff] (!%p141_p2)   ;;  %p168_p3 = scmp.lt.s32.totalorder (!%p141_p2), %s2240_s13, 1 }
   0x6   : > { %144 = sbr.rel (%p141_p2) target bundleno = 365 (0x16d), region = 28  ;;  %v2095_v1 = vld [vmem:[%s2559_s1 + $0x140] sm:$0xff] (!%p141_p2)   ;;  %1817 = vmatprep.subr.bf16.mxu0 (!%p141_p2), %v2094_v0  ;;  %v2098_v4 = vld [vmem:[%s2559_s1 + $0x148] sm:$0xff] (!%p141_p2)   ;;  %v2101_v7 = vld [vmem:[%s2559_s1 + $0x150] sm:$0xff] (!%p141_p2)  }
   0x7   : > { %v2096_v2 = vld [vmem:[%s2559_s1 + $0xc0] sm:$0xff] (!%p141_p2)   ;;  %1973 = vmatprep.subr.bf16.mxu1 (!%p141_p2), %v2095_v1  ;;  %v2099_v5 = vld [vmem:[%s2559_s1 + $0xc8] sm:$0xff] (!%p141_p2)   ;;  %v2102_v8 = vld [vmem:[%s2559_s1 + $0xd0] sm:$0xff] (!%p141_p2)  }
   0x8   : > { %1818 = vmatpush3.bf16.msra.mxu0 (!%p141_p2), %v2096_v2  ;;  %1974 = vmatpush3.bf16.msra.mxu1 (!%p141_p2), %v2095_v1  ;;  %v2103_v9 = vld [vmem:[%s2559_s1 + $0x118] sm:$0xff] (!%p141_p2)   ;;  %v2106_v12 = vld [vmem:[%s2559_s1 + $0x120] sm:$0xff] (!%p141_p2)   ;;  %v2109_v15 = vld [vmem:[%s2559_s1 + $0x128] sm:$0xff] (!%p141_p2)  }
   0x9   : > { %1819 = vmatprep.subr.bf16.mxu0 (!%p141_p2), %v2097_v3  ;;  %1975 = vmatprep.subr.bf16.mxu1 (!%p141_p2), %v2098_v4  ;;  %v2104_v10 = vld [vmem:[%s2559_s1 + $0x158] sm:$0xff] (!%p141_p2)   ;;  %v2107_v13 = vld [vmem:[%s2559_s1 + $0x160] sm:$0xff] (!%p141_p2)   ;;  %v2110_v16 = vld [vmem:[%s2559_s1 + $0x168] sm:$0xff] (!%p141_p2)  }
   0xa   : > { %v2105_v11 = vld [vmem:[%s2559_s1 + $0xd8] sm:$0xff] (!%p141_p2)   ;;  %v2108_v14 = vld [vmem:[%s2559_s1 + $0xe0] sm:$0xff] (!%p141_p2)   ;;  %v2111_v17 = vld [vmem:[%s2559_s1 + $0xe8] sm:$0xff] (!%p141_p2)  }
   0xb   : > { %v2112_v18 = vld [vmem:[%s2559_s1 + $0x130] sm:$0xff] (!%p141_p2)   ;;  %v2115_v21 = vld [vmem:[%s2559_s1 + $0x138] sm:$0xff] (!%p141_p2)   ;;  %v2122_v26 = vld [vmem:[%s2559_s1 + $0x40] sm:$0xff] (!%p141_p2)  }
   0xc   : > { %1820 = vmatpush3.bf16.msra.mxu0 (!%p141_p2), %v2099_v5  ;;  %1976 = vmatpush3.bf16.msra.mxu1 (!%p141_p2), %v2098_v4  ;;  %v2113_v19 = vld [vmem:[%s2559_s1 + $0x170] sm:$0xff] (!%p141_p2)   ;;  %v2116_v22 = vld [vmem:[%s2559_s1 + $0x178] sm:$0xff] (!%p141_p2)   ;;  %v2123_v28 = vld [vmem:[%s2559_s1 + $0x80] sm:$0xff] (!%p141_p2)  }
   0xd   : > { %1821 = vmatprep.subr.bf16.mxu0 %v2100_v6  ;;  %1977 = vmatprep.subr.bf16.mxu1 %v2101_v7  ;;  %s2288_s17 = scalar_select %p168_p3, %s2240_s13, 1  ;;  %v2114_v20 = vld [vmem:[%s2559_s1 + $0xf0] sm:$0xff]   ;;  %v2117_v25 = vld [vmem:[%s2559_s1 + $0xf8] sm:$0xff]   ;;  %v2125_v30 = vld [vmem:[%s2559_s1] sm:$0xff]  }
   0xe   : > { %v2126_v31 = vld [vmem:[%s2559_s1 + $0x48] sm:$0xff]   ;;  %v2132_v35 = vld [vmem:[%s2559_s1 + $0x50] sm:$0xff]   ;;  %v2135_v39 = vld [vmem:[%s2559_s1 + $0x58] sm:$0xff]  }
   0xf   : > { %s2085_s24 = smul.u32 216, %s2288_s17  ;;  %v2127_v32 = vld [vmem:[%s2559_s1 + $0x88] sm:$0xff]   ;;  %v2133_v36 = vld [vmem:[%s2559_s1 + $0x90] sm:$0xff]   ;;  %v2136_v40 = vld [vmem:[%s2559_s1 + $0x98] sm:$0xff]   ;;  %s1571_s25 = sshll.u32 %s2288_s17, 3 }
  0x10   : > { %1822 = vmatpush3.bf16.msra.mxu0 %v2102_v8  ;;  %1978 = vmatpush3.bf16.msra.mxu1 %v2101_v7  ;;  %v2128_v34 = vld [vmem:[%s2559_s1 + $0x8] sm:$0xff]   ;;  %v2134_v38 = vld [vmem:[%s2559_s1 + $0x10] sm:$0xff]   ;;  %v2137_v42 = vld [vmem:[%s2559_s1 + $0x18] sm:$0xff]   ;;  %s182_s28 = scalar_lea.vmem %s2561_s3, %s1571_s25 }
  0x11   : > { %1823 = vmatprep.subr.bf16.mxu0 %v2103_v9  ;;  %1979 = vmatprep.subr.bf16.mxu1 %v2104_v10  ;;  %s2315_s8 = scalar_lea.vmem %s2558_s0, %s2085_s24  ;;  %v2141_v43 = vld [vmem:[%s2559_s1 + $0x60] sm:$0xff]   ;;  %v2144_v47 = vld [vmem:[%s2559_s1 + $0x68] sm:$0xff]   ;;  %v2151_v52 = vld [vmem:[%s2559_s1 + $0x70] sm:$0xff]  }
  0x12   : > { %v2120_v23 = vld [vmem:[%s2315_s8 + $0x70] ss:$12 sps:$4 sm:$0xff]   ;;  %v2121_v24 = vld [vmem:[%s2315_s8 + $0x74] ss:$12 sps:$4 sm:$0xff]   ;;  %v2118_v27 = vld [vmem:[%s2315_s8 + $0x6c] ss:$12 sps:$4 sm:$0xff]  }
  0x13   : > { %553 = vmatprep.mubr.bf16.mxu0 %v2120_v23  ;;  %1989 = vmatprep.mubr.bf16.mxu1 %v2121_v24  ;;  %v2124_v29 = vld [vmem:[%s2315_s8 + $0x8c] ss:$12 sps:$4 sm:$0xff]   ;;  %v2129_v33 = vld [vmem:[%s2315_s8 + $0x88] ss:$12 sps:$4 sm:$0xff]   ;;  %v2131_v37 = vld [vmem:[%s2315_s8 + $0x84] ss:$12 sps:$4 sm:$0xff]  }
  0x14   : > { %1824 = vmatpush3.bf16.msra.mxu0 %v2105_v11  ;;  %1980 = vmatpush3.bf16.msra.mxu1 %v2104_v10  ;;  %v2138_v41 = vld [vmem:[%s2315_s8 + $0xa0] ss:$12 sps:$4 sm:$0xff]   ;;  %v2140_v44 = vld [vmem:[%s2315_s8 + $0x9c] ss:$12 sps:$4 sm:$0xff]   ;;  %v2147_v49 = vld [vmem:[%s2315_s8 + $0xb8] ss:$12 sps:$4 sm:$0xff]  }
  0x15   : > { %1825 = vmatprep.subr.bf16.mxu0 %v2106_v12  ;;  %1981 = vmatprep.subr.bf16.mxu1 %v2107_v13  ;;  %v2142_v45 = vld [vmem:[%s2559_s1 + $0xa0] sm:$0xff]   ;;  %v2145_v48 = vld [vmem:[%s2559_s1 + $0xa8] sm:$0xff]   ;;  %v2152_v53 = vld [vmem:[%s2559_s1 + $0xb0] sm:$0xff]  }
  0x16   : > { %v2143_v46 = vld [vmem:[%s2559_s1 + $0x20] sm:$0xff]   ;;  %v2146_v50 = vld [vmem:[%s2559_s1 + $0x28] sm:$0xff]   ;;  %v2154_v56 = vld [vmem:[%s2559_s1 + $0x30] sm:$0xff]  }
  0x17   : > { %v2150_v51 = vld [vmem:[%s2315_s8 + $0xa4] ss:$12 sps:$4 sm:$0xff]   ;;  %v2153_v54 = vld [vmem:[%s2315_s8 + $0xbc] ss:$12 sps:$4 sm:$0xff]   ;;  %v2149_v55 = vld [vmem:[%s2315_s8 + $0xb4] ss:$12 sps:$4 sm:$0xff]  }
  0x18   : > { %1826 = vmatpush3.bf16.msra.mxu0 %v2108_v14  ;;  %1982 = vmatpush3.bf16.msra.mxu1 %v2107_v13  ;;  %v2155_v57 = vld [vmem:[%s2559_s1 + $0x78] sm:$0xff]   ;;  %v184_v59 = vld [vmem:[%s2315_s8] sm:$0xff]  ;;  %v2409_v60 = vld [vmem:[%s2315_s8 + $0xc] sm:$0xff] }
  0x19   : > { %1827 = vmatprep.subr.bf16.mxu0 %v2109_v15  ;;  %1983 = vmatprep.subr.bf16.mxu1 %v2110_v16  ;;  %v2156_v58 = vld [vmem:[%s2559_s1 + $0xb8] sm:$0xff]   ;;  %v1657_v61 = vcombine.high %v184_v59, %v2409_v60  ;;  %v2160_v62 = vld [vmem:[%s2315_s8 + $0x8] ss:$12 sps:$4 sm:$0xff]   ;;  %v2161_v0 = vld [vmem:[%s2559_s1 + $0x1c0] sm:$0xff]   ;;  %v1656_v3 = vcombine.low %v184_v59, %v2409_v60 }
  0x1a   : > { %v2157_v63 = vld [vmem:[%s2559_s1 + $0x38] sm:$0xff]   ;;  %v2162_v1 = vld [vmem:[%s2559_s1 + $0x200] sm:$0xff]   ;;  %v2165_v5 = vld [vmem:[%s2559_s1 + $0x1c8] sm:$0xff]  }
  0x1b   : > { %v2163_v2 = vld [vmem:[%s2315_s8 + $0x20] ss:$12 sps:$4 sm:$0xff]   ;;  %v2434_v7 = vld [vmem:[%s2315_s8 + $0x18] sm:$0xff]  ;;  %v2437_v8 = vld [vmem:[%s2315_s8 + $0x24] sm:$0xff] }
  0x1c   : > { %1828 = vmatpush3.bf16.msra.mxu0 %v2111_v17  ;;  %1984 = vmatpush3.bf16.msra.mxu1 %v2110_v16  ;;  %v2164_v4 = vld [vmem:[%s2559_s1 + $0x180] sm:$0xff]   ;;  %v2166_v6 = vld [vmem:[%s2559_s1 + $0x208] sm:$0xff]   ;;  %v1660_v10 = vcombine.high %v2434_v7, %v2437_v8  ;;  %v2170_v11 = vld [vmem:[%s2559_s1 + $0x1d0] sm:$0xff]   ;;  %v1659_v14 = vcombine.low %v2434_v7, %v2437_v8 }
  0x1d   : > { %1829 = vmatprep.subr.bf16.mxu0 %v2112_v18  ;;  %1985 = vmatprep.subr.bf16.mxu1 %v2113_v19  ;;  %v2167_v9 = vld [vmem:[%s2559_s1 + $0x188] sm:$0xff]   ;;  %v2171_v12 = vld [vmem:[%s2559_s1 + $0x210] sm:$0xff]   ;;  %v2173_v15 = vld [vmem:[%s2559_s1 + $0x1d8] sm:$0xff]  }
  0x1e   : > { %v2172_v13 = vld [vmem:[%s2559_s1 + $0x190] sm:$0xff]   ;;  %v2174_v16 = vld [vmem:[%s2559_s1 + $0x218] sm:$0xff]   ;;  %v2180_v23 = vld [vmem:[%s2559_s1 + $0x1a0] sm:$0xff]  }
  0x1f   : > { %v2462_v17 = vld [vmem:[%s2315_s8 + $0x30] sm:$0xff]  ;;  %v2465_v18 = vld [vmem:[%s2315_s8 + $0x3c] sm:$0xff] }
  0x20   : > { %1830 = vmatpush3.bf16.msra.mxu0 %v2114_v20  ;;  %1986 = vmatpush3.bf16.msra.mxu1 %v2113_v19  ;;  %v1663_v19 = vcombine.high %v2462_v17, %v2465_v18  ;;  %v2175_v20 = vld [vmem:[%s2559_s1 + $0x198] sm:$0xff]   ;;  %v1662_v24 = vcombine.low %v2462_v17, %v2465_v18 }
  0x21   : > { %1831 = vmatprep.subr.bf16.mxu0 %v2115_v21  ;;  %1987 = vmatprep.subr.bf16.mxu1 %v2116_v22  ;;  %v2178_v21 = vld [vmem:[%s2559_s1 + $0x1e0] sm:$0xff]  }
  0x24   : > { %1832 = vmatpush3.bf16.msra.mxu0 %v2117_v25  ;;  %1988 = vmatpush3.bf16.msra.mxu1 %v2116_v22  ;;  %v2179_v22 = vld [vmem:[%s2559_s1 + $0x220] sm:$0xff]   ;;  %v2181_v25 = vld [vmem:[%s2559_s1 + $0x1e8] sm:$0xff]  }
  0x25   : > { %1869 = vmatprep.subr.bf16.mxu0 %v2122_v26  ;;  %1997 = vmatprep.subr.bf16.mxu1 %v2123_v28  ;;  %v2182_v26 = vld [vmem:[%s2559_s1 + $0x228] sm:$0xff]  }
  0x27   : > { %554 = vmatmul.mubr.bf16.vlgmr.msra.gmra.mrb[0].mxu0 %v2118_v27  ;;  %1990 = vmatmul.mubr.bf16.vlgmr.msra.gmra.mrb[0].mxu1 %v2124_v29  ;;  %v196_v27 = vld [vmem:[%s2315_s8 + $0x48] sm:$0xff]  ;;  %v2185_v29 = vld [vmem:[%s2315_s8 + $0x38] ss:$12 sps:$4 sm:$0xff]  }
  0x28   : > { %1870 = vmatpush3.bf16.msra.mxu0 %v2125_v30  ;;  %1998 = vmatpush3.bf16.msra.mxu1 %v2123_v28  ;;  %v198_v28 = vld [vmem:[%s2315_s8 + $0x54] sm:$0xff]  ;;  %v2187_v30 = vld [vmem:[%s2315_s8 + $0x50] ss:$12 sps:$4 sm:$0xff]  }
  0x29   : > { %1871 = vmatprep.subr.bf16.mxu0 %v2126_v31  ;;  %1999 = vmatprep.subr.bf16.mxu1 %v2127_v32  ;;  %v1666_v31 = vcombine.high %v196_v27, %v198_v28 }
  0x2a   : > { %561 = vmatprep.mubr.bf16.mxu0 %v2129_v33  ;;  %1993 = vmatprep.mubr.bf16.mxu1 %v2150_v51  ;;  %v2188_v33 = vld [vmem:[%s2559_s1 + $0x1f0] sm:$0xff]  }
  0x2c   : > { %1872 = vmatpush3.bf16.msra.mxu0 %v2128_v34  ;;  %2000 = vmatpush3.bf16.msra.mxu1 %v2127_v32  ;;  %v2183_v32 = vld [vmem:[%s2559_s1 + $0x1a8] sm:$0xff]   ;;  %v2189_v34 = vld [vmem:[%s2559_s1 + $0x230] sm:$0xff]  }
  0x2d   : > { %1873 = vmatprep.subr.bf16.mxu0 %v2132_v35  ;;  %2001 = vmatprep.subr.bf16.mxu1 %v2133_v36  ;;  %v2190_v35 = vld [vmem:[%s2559_s1 + $0x1b0] sm:$0xff]  }
  0x2f   : > { %562 = vmatmul.mubr.bf16.gmra.mrb[4].mxu0 %v2131_v37  ;;  %1994 = vmatmul.mubr.bf16.gmra.mrb[4].mxu1 %v2153_v54  ;;  %v2191_v37 = vld [vmem:[%s2559_s1 + $0x1f8] sm:$0xff]  }
  0x30   : > { %1874 = vmatpush3.bf16.msra.mxu0 %v2134_v38  ;;  %2002 = vmatpush3.bf16.msra.mxu1 %v2133_v36  ;;  %v1665_v36 = vcombine.low %v196_v27, %v198_v28  ;;  %v2196_v38 = vld [vmem:[%s2315_s8 + $0x14] ss:$12 sps:$4 sm:$0xff]  }
  0x31   : > { %1875 = vmatprep.subr.bf16.mxu0 %v2135_v39  ;;  %2003 = vmatprep.subr.bf16.mxu1 %v2136_v40  ;;  %v2192_v39 = vld [vmem:[%s2559_s1 + $0x238] sm:$0xff]  }
  0x32   : > { %569 = vmatprep.mubr.bf16.mxu0 %v2138_v41  ;;  %2013 = vmatprep.mubr.bf16.mxu1 %v2160_v62  ;;  %v2193_v41 = vld [vmem:[%s2559_s1 + $0x1b8] sm:$0xff]  }
  0x34   : > { %1876 = vmatpush3.bf16.msra.mxu0 %v2137_v42  ;;  %2004 = vmatpush3.bf16.msra.mxu1 %v2136_v40  ;;  %v1741_v40 = vcombine.high %v2409_v60, %v2434_v7  ;;  %v1740_v42 = vcombine.low %v2409_v60, %v2434_v7 }
  0x35   : > { %1877 = vmatprep.subr.bf16.mxu0 %v2141_v43  ;;  %2005 = vmatprep.subr.bf16.mxu1 %v2142_v45  ;;  %v2197_v43 = vld [vmem:[%s2315_s8 + $0x2c] ss:$12 sps:$4 sm:$0xff]  }
  0x37   : > { %570 = vmatmul.mubr.bf16.gmra.mrb[8].mxu0 %v2140_v44  ;;  %v1744_v44 = vcombine.high %v2437_v8, %v2462_v17 }
  0x38   : > { %1878 = vmatpush3.bf16.msra.mxu0 %v2143_v46  ;;  %2006 = vmatpush3.bf16.msra.mxu1 %v2142_v45  ;;  %v2199_v45 = vld [vmem:[%s2315_s8 + $0x44] ss:$12 sps:$4 sm:$0xff]   ;;  %v1743_v46 = vcombine.low %v2437_v8, %v2462_v17 }
  0x39   : > { %1879 = vmatprep.subr.bf16.mxu0 %v2144_v47  ;;  %2007 = vmatprep.subr.bf16.mxu1 %v2145_v48  ;;  %v2201_v47 = vld [vmem:[%s2315_s8 + $0x5c] ss:$12 sps:$4 sm:$0xff]  }
  0x3a   : > { %577 = vmatprep.mubr.bf16.mxu0 %v2147_v49  ;;  %v1003_v49 = vld [vmem:[%s2315_s8 + $0x60] sm:$0xff]  ;;  %s1569_s8 = sshll.u32 %s2240_s13, 3 }
  0x3b   : > { %v1750_v51 = vcombine.high %v198_v28, %v1003_v49  ;;  %p174_p4 = scmp.lt.s32.totalorder %s1569_s8, 15 }
  0x3c   : > { %1880 = vmatpush3.bf16.msra.mxu0 %v2146_v50  ;;  %2008 = vmatpush3.bf16.msra.mxu1 %v2145_v48  ;;  %v1747_v48 = vcombine.high %v2465_v18, %v196_v27  ;;  %v1746_v50 = vcombine.low %v2465_v18, %v196_v27 }
  0x3d   : > { %1881 = vmatprep.subr.bf16.mxu0 %v2151_v52  ;;  %2009 = vmatprep.subr.bf16.mxu1 %v2152_v53  ;;  %v1749_v52 = vcombine.low %v198_v28, %v1003_v49  ;;  %s2563_s8 = smov (!%p174_p4, %s1569_s8), 15 }
  0x3e   : > { %s1570_s13 = sshll.u32 %s2563_s8, 2 }
  0x3f   : > { %578 = vmatmul.mubr.bf16.gmra.mrb[12].mxu0 %v2149_v55  ;;  %s2541_s24 = scalar_lea.vmem %s2560_s2, %s1570_s13 }
  0x40   : > { %1882 = vmatpush3.bf16.msra.mxu0 %v2154_v56  ;;  %2010 = vmatpush3.bf16.msra.mxu1 %v2152_v53 }
  0x41   : > { %1883 = vmatprep.subr.bf16.mxu0 %v2155_v57  ;;  %2011 = vmatprep.subr.bf16.mxu1 %v2156_v58 }
  0x42   : > { %891 = vmatprep.mubr.bf16.mxu0 %v1657_v61 }
  0x44   : > { %1884 = vmatpush3.bf16.msra.mxu0 %v2157_v63  ;;  %2012 = vmatpush3.bf16.msra.mxu1 %v2156_v58 }
  0x45   : > { %1921 = vmatprep.subr.bf16.mxu0 %v2161_v0  ;;  %2021 = vmatprep.subr.bf16.mxu1 %v2162_v1 }
  0x47   : > { %892 = vmatmul.mubr.bf16.vlgmr.msra.gmra.mrb[16].mxu0 %v1656_v3  ;;  %2014 = vmatmul.mubr.bf16.vlgmr.msra.gmra.mrb[0].mxu1 %v2163_v2 }
  0x48   : > { %1922 = vmatpush3.bf16.msra.mxu0 %v2164_v4  ;;  %2022 = vmatpush3.bf16.msra.mxu1 %v2162_v1 }
  0x49   : > { %1923 = vmatprep.subr.bf16.mxu0 %v2165_v5  ;;  %2023 = vmatprep.subr.bf16.mxu1 %v2166_v6 }
  0x4a   : > { %899 = vmatprep.mubr.bf16.mxu0 %v1660_v10  ;;  %2017 = vmatprep.mubr.bf16.mxu1 %v2185_v29 }
  0x4c   : > { %1924 = vmatpush3.bf16.msra.mxu0 %v2167_v9  ;;  %2024 = vmatpush3.bf16.msra.mxu1 %v2166_v6 }
  0x4d   : > { %1925 = vmatprep.subr.bf16.mxu0 %v2170_v11  ;;  %2025 = vmatprep.subr.bf16.mxu1 %v2171_v12 }
  0x4f   : > { %900 = vmatmul.mubr.bf16.gmra.mrb[20].mxu0 %v1659_v14  ;;  %2018 = vmatmul.mubr.bf16.gmra.mrb[4].mxu1 %v2187_v30 }
  0x50   : > { %1926 = vmatpush3.bf16.msra.mxu0 %v2172_v13  ;;  %2026 = vmatpush3.bf16.msra.mxu1 %v2171_v12 }
  0x51   : > { %1927 = vmatprep.subr.bf16.mxu0 %v2173_v15  ;;  %2027 = vmatprep.subr.bf16.mxu1 %v2174_v16 }
  0x52   : > { %907 = vmatprep.mubr.bf16.mxu0 %v1663_v19  ;;  %2037 = vmatprep.mubr.bf16.mxu1 %v2196_v38 }
  0x54   : > { %1928 = vmatpush3.bf16.msra.mxu0 %v2175_v20  ;;  %2028 = vmatpush3.bf16.msra.mxu1 %v2174_v16 }
  0x55   : > { %1929 = vmatprep.subr.bf16.mxu0 %v2178_v21  ;;  %2029 = vmatprep.subr.bf16.mxu1 %v2179_v22 }
  0x57   : > { %908 = vmatmul.mubr.bf16.gmra.mrb[24].mxu0 %v1662_v24 }
  0x58   : > { %1930 = vmatpush3.bf16.msra.mxu0 %v2180_v23  ;;  %2030 = vmatpush3.bf16.msra.mxu1 %v2179_v22 }
  0x59   : > { %1931 = vmatprep.subr.bf16.mxu0 %v2181_v25  ;;  %2031 = vmatprep.subr.bf16.mxu1 %v2182_v26 }
  0x5a   : > { %915 = vmatprep.mubr.bf16.mxu0 %v1666_v31 }
  0x5c   : > { %1932 = vmatpush3.bf16.msra.mxu0 %v2183_v32  ;;  %2032 = vmatpush3.bf16.msra.mxu1 %v2182_v26 }
  0x5d   : > { %1933 = vmatprep.subr.bf16.mxu0 %v2188_v33  ;;  %2033 = vmatprep.subr.bf16.mxu1 %v2189_v34 }
  0x5f   : > { %916 = vmatmul.mubr.bf16.gmra.mrb[28].mxu0 %v1665_v36 }
  0x60   : > { %1934 = vmatpush3.bf16.msra.mxu0 %v2190_v35  ;;  %2034 = vmatpush3.bf16.msra.mxu1 %v2189_v34 }
  0x61   : > { %1935 = vmatprep.subr.bf16.mxu0 %v2191_v37  ;;  %2035 = vmatprep.subr.bf16.mxu1 %v2192_v39 }
  0x62   : > { %1294 = vmatprep.mubr.bf16.mxu0 %v1741_v40 }
  0x64   : > { %1936 = vmatpush3.bf16.msra.mxu0 %v2193_v41  ;;  %2036 = vmatpush3.bf16.msra.mxu1 %v2192_v39 }
  0x67   : > { %1295 = vmatmul.mubr.bf16.vlgmr.msra.gmra.mrb[32].mxu0 %v1740_v42  ;;  %2038 = vmatmul.mubr.bf16.vlgmr.msra.gmra.mrb[0].mxu1 %v2197_v43 }
  0x68   : > { %1302 = vmatprep.mubr.bf16.mxu0 %v1744_v44  ;;  %2041 = vmatprep.mubr.bf16.mxu1 %v2199_v45 }
  0x6f   : > { %1303 = vmatmul.mubr.bf16.gmra.mrb[36].mxu0 %v1743_v46  ;;  %2042 = vmatmul.mubr.bf16.gmra.mrb[4].mxu1 %v2201_v47 }
  0x70   : > { %1310 = vmatprep.mubr.bf16.mxu0 %v1747_v48 }
  0x77   : > { %1311 = vmatmul.mubr.bf16.gmra.mrb[40].mxu0 %v1746_v50 }
  0x78   : > { %1318 = vmatprep.mubr.bf16.mxu0 %v1750_v51 }
  0x7f   : > { %1319 = vmatmul.mubr.bf16.gmra.mrb[44].mxu0 %v1749_v52 }
  0xfa   : > { %v1833_v53 = vpop.f32.mrb[0].mxu0 }
  0xfb   : > { %v1834_v54 = vpop.f32.mrb[1].mxu0 }
  0xfc   : > { %v1835_v55 = vadd.f32 %v1834_v54, %v1833_v53  ;;  %v1836_v56 = vpop.f32.mrb[2].mxu0 }
  0xfd   : > { %v1837_v57 = vpop.f32.mrb[3].mxu0 }
  0xfe   : > { %v1838_v58 = vadd.f32 %v1837_v57, %v1836_v56 }
 0x102   : > { %v1839_v59 = vpop.f32.mrb[4].mxu0 }
 0x103   : > { %v1840_v60 = vpop.f32.mrb[5].mxu0 }
 0x104   : > { %v1841_v61 = vadd.f32 %v1840_v60, %v1839_v59  ;;  %v1842_v62 = vpop.f32.mrb[6].mxu0 }
 0x105   : > { %v1843_v63 = vpop.f32.mrb[7].mxu0 }
 0x106   : > { %v1844_v0 = vadd.f32 %v1843_v63, %v1842_v62 }
 0x10a   : > { %v1845_v1 = vpop.f32.mrb[8].mxu0 }
 0x10b   : > { %v1846_v2 = vpop.f32.mrb[9].mxu0 }
 0x10c   : > { %v1847_v3 = vadd.f32 %v1846_v2, %v1845_v1  ;;  %v1848_v4 = vpop.f32.mrb[10].mxu0 }
 0x10d   : > { %v1849_v5 = vpop.f32.mrb[11].mxu0 }
 0x10e   : > { %v1850_v6 = vadd.f32 %v1849_v5, %v1848_v4 }
 0x112   : > { %v1851_v7 = vpop.f32.mrb[12].mxu0 }
 0x113   : > { %v1852_v8 = vpop.f32.mrb[13].mxu0 }
 0x114   : > { %v1853_v9 = vadd.f32 %v1852_v8, %v1851_v7  ;;  %v1854_v10 = vpop.f32.mrb[14].mxu0 }
 0x115   : > { %v1855_v11 = vpop.f32.mrb[15].mxu0 }
 0x116   : > { %v1856_v12 = vadd.f32 %v1855_v11, %v1854_v10 }
 0x11a   : > { %v1885_v13 = vpop.f32.mrb[16].mxu0 }
 0x11b   : > { %v1886_v14 = vpop.f32.mrb[17].mxu0 }
 0x11c   : > { %v1887_v15 = vadd.f32 %v1886_v14, %v1885_v13  ;;  %v1888_v16 = vpop.f32.mrb[18].mxu0 }
 0x11d   : > { %v1889_v17 = vpop.f32.mrb[19].mxu0 }
 0x11e   : > { %v2048_v18 = vadd.f32 %v1887_v15, %v1835_v55  ;;  %v1890_v19 = vadd.f32 %v1889_v17, %v1888_v16 }
 0x120   : > { %v2054_v20 = vadd.f32 %v1890_v19, %v1838_v58 }
 0x122   : > { %v1891_v21 = vpop.f32.mrb[20].mxu0 }
 0x123   : > { %v1892_v22 = vpop.f32.mrb[21].mxu0 }
 0x124   : > { %v1893_v23 = vadd.f32 %v1892_v22, %v1891_v21  ;;  %v1894_v24 = vpop.f32.mrb[22].mxu0 }
 0x125   : > { %v1895_v25 = vpop.f32.mrb[23].mxu0 }
 0x126   : > { %v2045_v26 = vadd.f32 %v1893_v23, %v1841_v61  ;;  %v1896_v27 = vadd.f32 %v1895_v25, %v1894_v24 }
 0x128   : > { %v2051_v28 = vadd.f32 %v1896_v27, %v1844_v0 }
 0x12a   : > { %v1897_v29 = vpop.f32.mrb[24].mxu0 }
 0x12b   : > { %v1898_v30 = vpop.f32.mrb[25].mxu0 }
 0x12c   : > { %v1899_v31 = vadd.f32 %v1898_v30, %v1897_v29  ;;  %v1900_v32 = vpop.f32.mrb[26].mxu0 }
 0x12d   : > { %v1901_v33 = vpop.f32.mrb[27].mxu0 }
 0x12e   : > { %v2529_v34 = vadd.f32 %v1899_v31, %v1847_v3  ;;  %v1902_v35 = vadd.f32 %v1901_v33, %v1900_v32 }
 0x130   : > { %v2531_v36 = vadd.f32 %v1902_v35, %v1850_v6 }
 0x132   : > { %v1903_v37 = vpop.f32.mrb[28].mxu0 }
 0x133   : > { %v1904_v38 = vpop.f32.mrb[29].mxu0 }
 0x134   : > { %v1905_v39 = vadd.f32 %v1904_v38, %v1903_v37  ;;  %v1906_v40 = vpop.f32.mrb[30].mxu0 }
 0x135   : > { %v1907_v41 = vpop.f32.mrb[31].mxu0 }
 0x136   : > { %v2534_v42 = vadd.f32 %v1905_v39, %v1853_v9  ;;  %v1908_v43 = vadd.f32 %v1907_v41, %v1906_v40 }
 0x138   : > { %v2536_v44 = vadd.f32 %v1908_v43, %v1856_v12 }
 0x13a   : > { %v1937_v45 = vpop.f32.mrb[32].mxu0  ;;  %v2039_v46 = vpop.f32.mrb[0].mxu1 }
 0x13b   : > { %v1938_v47 = vpop.f32.mrb[33].mxu0  ;;  %v1361_v48 = vpop.f32.mrb[1].mxu1 }
 0x13c   : > { %v1939_v49 = vadd.f32 %v1938_v47, %v1937_v45  ;;  %v1940_v50 = vpop.f32.mrb[34].mxu0  ;;  %v2040_v51 = vpop.f32.mrb[2].mxu1 }
 0x13d   : > { %v1941_v52 = vpop.f32.mrb[35].mxu0  ;;  %v1364_v53 = vpop.f32.mrb[3].mxu1 }
 0x13e   : > { %v2049_v54 = vadd.f32 %v2048_v18, %v1939_v49  ;;  %v1942_v55 = vadd.f32 %v1941_v52, %v1940_v50 }
 0x140   : > { %v2050_v56 = vadd.f32 %v2049_v54, %v1361_v48  ;;  %v2055_v57 = vadd.f32 %v2054_v20, %v1942_v55 }
 0x142   : > { %v2056_v58 = vadd.f32 %v2055_v57, %v1364_v53  ;;  %v1943_v59 = vpop.f32.mrb[36].mxu0  ;;  %v2043_v60 = vpop.f32.mrb[4].mxu1  ;;  %v1454_v61 = vmul.f32 %v2050_v56, %v2050_v56 }
 0x143   : > { %v1944_v62 = vpop.f32.mrb[37].mxu0  ;;  %v1377_v63 = vpop.f32.mrb[5].mxu1 }
 0x144   : > { %v1797_v0 = vpack.c.bf16 %v2056_v58, %v2050_v56  ;;  %v1440_v1 = vadd.f32 %v2056_v58, %v2050_v56  ;;  %v1455_v2 = vmul.f32 %v2056_v58, %v2056_v58  ;;  %v1945_v3 = vadd.f32 %v1944_v62, %v1943_v59  ;;  %v1946_v4 = vpop.f32.mrb[38].mxu0  ;;  %v2044_v5 = vpop.f32.mrb[6].mxu1 }
 0x145   : > { %v1947_v6 = vpop.f32.mrb[39].mxu0  ;;  %v1380_v7 = vpop.f32.mrb[7].mxu1 }
 0x146   : > { %1798 = vst [vmem:[%s2541_s24] sm:$0xff] %v1797_v0   ;;  %v1462_v8 = vadd.f32 %v1455_v2, %v1454_v61  ;;  %v2046_v9 = vadd.f32 %v2045_v26, %v1945_v3  ;;  %v1948_v10 = vadd.f32 %v1947_v6, %v1946_v4 }
 0x148   : > { %v2047_v11 = vadd.f32 %v2046_v9, %v2039_v46  ;;  %v2052_v12 = vadd.f32 %v2051_v28, %v1948_v10 }
 0x14a   : > { %v1441_v13 = vadd.f32 %v2047_v11, %v1440_v1  ;;  %v1456_v14 = vmul.f32 %v2047_v11, %v2047_v11  ;;  %v2053_v15 = vadd.f32 %v2052_v12, %v2040_v51  ;;  %v1949_v16 = vpop.f32.mrb[40].mxu0 }
 0x14b   : > { %v1950_v17 = vpop.f32.mrb[41].mxu0 }
 0x14c   : > { %v1463_v18 = vadd.f32 %v1462_v8, %v1456_v14  ;;  %v1802_v19 = vpack.c.bf16 %v2053_v15, %v2047_v11  ;;  %v1442_v20 = vadd.f32 %v2053_v15, %v1441_v13  ;;  %v1457_v21 = vmul.f32 %v2053_v15, %v2053_v15  ;;  %v1952_v22 = vpop.f32.mrb[42].mxu0 }
 0x14d   : > { %v1951_v23 = vadd.f32 %v1950_v17, %v1949_v16  ;;  %v1953_v24 = vpop.f32.mrb[43].mxu0 }
 0x14e   : > { %1814 = vst [vmem:[%s2541_s24 + $0x8] sm:$0xff] %v1802_v19   ;;  %v1464_v25 = vadd.f32 %v1463_v18, %v1457_v21  ;;  %v1954_v27 = vadd.f32 %v1953_v24, %v1952_v22 }
 0x14f   : > { %v2061_v26 = vadd.f32 %v2529_v34, %v1951_v23 }
 0x150   : > { %v2067_v28 = vadd.f32 %v2531_v36, %v1954_v27 }
 0x151   : > { %v2062_v29 = vadd.f32 %v2061_v26, %v1377_v63 }
 0x152   : > { %v2068_v30 = vadd.f32 %v2067_v28, %v1380_v7  ;;  %v1955_v31 = vpop.f32.mrb[44].mxu0 }
 0x153   : > { %v1443_v32 = vadd.f32 %v2062_v29, %v1442_v20  ;;  %v1458_v33 = vmul.f32 %v2062_v29, %v2062_v29  ;;  %v1956_v35 = vpop.f32.mrb[45].mxu0 }
 0x154   : > { %v1807_v37 = vpack.c.bf16 %v2068_v30, %v2062_v29  ;;  %v1459_v38 = vmul.f32 %v2068_v30, %v2068_v30  ;;  %v1957_v39 = vadd.f32 %v1956_v35, %v1955_v31  ;;  %v1958_v40 = vpop.f32.mrb[46].mxu0 }
 0x155   : > { %v1465_v41 = vadd.f32 %v1464_v25, %v1458_v33  ;;  %v1444_v43 = vadd.f32 %v2068_v30, %v1443_v32  ;;  %v1959_v45 = vpop.f32.mrb[47].mxu0 }
 0x156   : > { %1815 = vst [vmem:[%s2541_s24 + $0x10] sm:$0xff] %v1807_v37   ;;  %v2058_v46 = vadd.f32 %v2534_v42, %v1957_v39  ;;  %v1960_v34 = vadd.f32 %v1959_v45, %v1958_v40 }
 0x157   : > { %v1466_v47 = vadd.f32 %v1465_v41, %v1459_v38 }
 0x158   : > { %v2059_v36 = vadd.f32 %v2058_v46, %v2043_v60  ;;  %v2064_v48 = vadd.f32 %v2536_v44, %v1960_v34 }
 0x15a   : > { %v1445_v49 = vadd.f32 %v2059_v36, %v1444_v43  ;;  %v1460_v50 = vmul.f32 %v2059_v36, %v2059_v36  ;;  %v2065_v51 = vadd.f32 %v2064_v48, %v2044_v5 }
 0x15c   : > { %v1467_v52 = vadd.f32 %v1466_v47, %v1460_v50  ;;  %v1812_v53 = vpack.c.bf16 %v2065_v51, %v2059_v36  ;;  %v1446_v54 = vadd.f32 %v2065_v51, %v1445_v49  ;;  %v1461_v55 = vmul.f32 %v2065_v51, %v2065_v51 }
 0x15e   : > { %1816 = vst [vmem:[%s2541_s24 + $0x18] sm:$0xff] %v1812_v53   ;;  %v1447_v56 = vrot.slane %v1446_v54, 4  ;;  %v1468_v57 = vadd.f32 %v1467_v52, %v1461_v55 }
 0x160   : > { %v1448_v58 = vadd.f32 %v1447_v56, %v1446_v54  ;;  %v1469_v59 = vrot.slane %v1468_v57, 4 }
 0x162   : > { %v1449_v61 = vrot.slane %v1448_v58, 2  ;;  %v1470_v42 = vadd.f32 %v1469_v59, %v1468_v57 }
 0x164   : > { %v1450_v62 = vadd.f32 %v1449_v61, %v1448_v58  ;;  %v1471_v60 = vrot.slane %v1470_v42, 2 }
 0x166   : > { %v1451_v63 = vrot.slane %v1450_v62, 1  ;;  %v1472_v0 = vadd.f32 %v1471_v60, %v1470_v42 }
 0x168   : > { %v1452_v44 = vadd.f32 %v1451_v63, %v1450_v62  ;;  %v1473_v1 = vrot.slane %v1472_v0, 1 }
 0x16a   : > { %1453 = vst [vmem:[%s182_s28] sm:$0x1] %v1452_v44  ;;  %v1474_v2 = vadd.f32 %v1473_v1, %v1472_v0 }
 0x16c   : > { %1475 = vst [vmem:[%s182_s28 + $0x1] sm:$0x1] %v1474_v2 }
 0x16d PF: > { %s14_s12 = sadd.s32 1, %s2212_s12  }
 0x16e   : > { %p11_p5 = scmp.ge.s32.totalorder %s14_s12, 4  }
 0x170   :  { %13 = sbr.rel (!%p11_p5) target bundleno = 1 (0x1), region = 72 }

// kernel: bottleneck_forward.7
= control target key start
LH: loop header
LB: loop body
LE: loop exit
PB: predicated region body
PF: predicated region fallthrough
CT: control target
= control target key end

     0   :  { %s673_s12 = smov 0   ;;  %s735_s0 = inlined_call_operand.vmem [shape: bf16[128,128], index: 0, kind: input, shape index: {}]   ;;  %s736_s1 = inlined_call_operand.vmem [shape: bf16[128,128], index: 1, kind: input, shape index: {}]   ;;  %s737_s2 = inlined_call_operand.vmem [shape: bf16[128,128], index: 2, kind: output, shape index: {0}]   ;;  %s738_s3 = inlined_call_operand.vmem [shape: f32[16,128], index: 3, kind: output, shape index: {1}]  }
   0x1 LB: > { %s679_s13 = sadd.s32 4294967295, %s651_s12   ;;  %p514_p0 = scmp.ge.s32.totalorder %s651_s12, 1  ;;  %s651_s12 = sphi %s673_s12, %s14_s12  }
   0x2   : > { %p141_p1 = scmp.lt.s32.totalorder %s651_s12, 3 }
   0x4   : > { %p142_p2 = pnand %p514_p0, %p141_p1 }
   0x5   : > { %v633_v0 = vld [vmem:[%s736_s1] sm:$0xff] (!%p142_p2)   ;;  %s515_s16 = sshll.u32 (!%p142_p2), %s679_s13, 3  ;;  %v634_v1 = vld [vmem:[%s736_s1 + $0x8] sm:$0xff] (!%p142_p2)   ;;  %v635_v2 = vld [vmem:[%s736_s1 + $0x10] sm:$0xff] (!%p142_p2)   ;;  %p181_p4 = scmp.lt.s32.totalorder (!%p142_p2), %s679_s13, 1 }
   0x6   : > { %145 = sbr.rel (%p142_p2) target bundleno = 282 (0x11a), region = 28  ;;  %p170_p3 = scmp.lt.s32.totalorder (!%p142_p2), %s515_s16, 15  ;;  %585 = vmatprep.subr.bf16.mxu0 (!%p142_p2), %v633_v0  ;;  %609 = vmatprep.subr.bf16.mxu1 (!%p142_p2), %v633_v0  ;;  %v636_v3 = vld [vmem:[%s736_s1 + $0x18] sm:$0xff] (!%p142_p2)   ;;  %v637_v6 = vld [vmem:[%s736_s1 + $0x20] sm:$0xff] (!%p142_p2)   ;;  %v638_v7 = vld [vmem:[%s736_s1 + $0x28] sm:$0xff] (!%p142_p2)  }
   0x7   : > { %586 = vmatpush3.bf16.msra.mxu0 (!%p142_p2), %v633_v0  ;;  %617 = vmatpush3.bf16.msra.mxu1 (!%p142_p2), %v633_v0  ;;  %v639_v8 = vld [vmem:[%s736_s1 + $0x30] sm:$0xff] (!%p142_p2)   ;;  %v640_v9 = vld [vmem:[%s736_s1 + $0x38] sm:$0xff] (!%p142_p2)  }
   0x8   : > { %587 = vmatprep.subr.bf16.mxu0 (!%p142_p2), %v634_v1  ;;  %610 = vmatprep.subr.bf16.mxu1 (!%p142_p2), %v634_v1 }
   0xb   : > { %588 = vmatpush3.bf16.msra.mxu0 (!%p142_p2), %v634_v1  ;;  %618 = vmatpush3.bf16.msra.mxu1 (!%p142_p2), %v634_v1 }
   0xc   : > { %589 = vmatprep.subr.bf16.mxu0 (!%p142_p2), %v635_v2  ;;  %611 = vmatprep.subr.bf16.mxu1 (!%p142_p2), %v635_v2 }
   0xd   : > { %s740_s16 = smov (!%p170_p3, %s515_s16), 15  ;;  %s742_s13 = smov (!%p181_p4, %s679_s13), 1 }
   0xe   : > { %s516_s21 = sshll.u32 %s740_s16, 2  ;;  %s519_s11 = sshll.u32 %s742_s13, 3 }
   0xf   : > { %s701_s24 = scalar_lea.vmem %s735_s0, %s516_s21  ;;  %590 = vmatpush3.bf16.msra.mxu0 %v635_v2  ;;  %619 = vmatpush3.bf16.msra.mxu1 %v635_v2  ;;  %s179_s10 = scalar_lea.vmem %s737_s2, %s516_s21 }
  0x10   : > { %v641_v4 = vld [vmem:[%s701_s24] sm:$0xff]   ;;  %v643_v5 = vld [vmem:[%s701_s24 + $0x10] sm:$0xff]   ;;  %591 = vmatprep.subr.bf16.mxu0 %v636_v3  ;;  %612 = vmatprep.subr.bf16.mxu1 %v636_v3  ;;  %v642_v10 = vld [vmem:[%s701_s24 + $0x8] sm:$0xff]   ;;  %s184_s16 = scalar_lea.vmem %s738_s3, %s519_s11 }
  0x11   : > { %601 = vmatprep.mubr.bf16.mxu0 %v641_v4  ;;  %605 = vmatprep.mubr.bf16.mxu1 %v643_v5  ;;  %v644_v11 = vld [vmem:[%s701_s24 + $0x18] sm:$0xff]  }
  0x13   : > { %592 = vmatpush3.bf16.msra.mxu0 %v636_v3  ;;  %620 = vmatpush3.bf16.msra.mxu1 %v636_v3 }
  0x14   : > { %593 = vmatprep.subr.bf16.mxu0 %v637_v6  ;;  %613 = vmatprep.subr.bf16.mxu1 %v637_v6 }
  0x17   : > { %594 = vmatpush3.bf16.msra.mxu0 %v637_v6  ;;  %621 = vmatpush3.bf16.msra.mxu1 %v637_v6 }
  0x18   : > { %595 = vmatprep.subr.bf16.mxu0 %v638_v7  ;;  %614 = vmatprep.subr.bf16.mxu1 %v638_v7 }
  0x1b   : > { %596 = vmatpush3.bf16.msra.mxu0 %v638_v7  ;;  %622 = vmatpush3.bf16.msra.mxu1 %v638_v7 }
  0x1c   : > { %597 = vmatprep.subr.bf16.mxu0 %v639_v8  ;;  %615 = vmatprep.subr.bf16.mxu1 %v639_v8 }
  0x1f   : > { %598 = vmatpush3.bf16.msra.mxu0 %v639_v8  ;;  %623 = vmatpush3.bf16.msra.mxu1 %v639_v8 }
  0x20   : > { %599 = vmatprep.subr.bf16.mxu0 %v640_v9  ;;  %616 = vmatprep.subr.bf16.mxu1 %v640_v9 }
  0x23   : > { %600 = vmatpush3.bf16.msra.mxu0 %v640_v9  ;;  %624 = vmatpush3.bf16.msra.mxu1 %v640_v9 }
  0x26   : > { %602 = vmatmul.mubr.bf16.vlgmr.msra.gmra.mrb[0].mxu0 %v642_v10  ;;  %606 = vmatmul.mubr.bf16.vlgmr.msra.gmra.mrb[0].mxu1 %v644_v11 }
  0xf9   : > { %v603_v12 = vpop.f32.mrb[0].mxu0  ;;  %v607_v13 = vpop.f32.mrb[0].mxu1 }
  0xfa   : > { %v316_v14 = vpop.f32.mrb[1].mxu0  ;;  %v332_v15 = vpop.f32.mrb[1].mxu1  ;;  %v403_v27 = vmul.f32 %v603_v12, %v603_v12  ;;  %v407_v39 = vmul.f32 %v607_v13, %v607_v13 }
  0xfb   : > { %v604_v16 = vpop.f32.mrb[2].mxu0  ;;  %v608_v17 = vpop.f32.mrb[2].mxu1  ;;  %v401_v18 = vmul.f32 %v316_v14, %v316_v14  ;;  %v405_v33 = vmul.f32 %v332_v15, %v332_v15 }
  0xfc   : > { %v558_v19 = vpack.c.bf16 %v604_v16, %v603_v12  ;;  %v319_v20 = vpop.f32.mrb[3].mxu0  ;;  %v568_v21 = vpack.c.bf16 %v608_v17, %v607_v13  ;;  %v335_v22 = vpop.f32.mrb[3].mxu1  ;;  %v404_v30 = vmul.f32 %v604_v16, %v604_v16  ;;  %v408_v42 = vmul.f32 %v608_v17, %v608_v17 }
  0xfd   : > { %v553_v23 = vpack.c.bf16 %v319_v20, %v316_v14  ;;  %v387_v24 = vadd.f32 %v319_v20, %v316_v14  ;;  %v402_v25 = vmul.f32 %v319_v20, %v319_v20  ;;  %v563_v26 = vpack.c.bf16 %v335_v22, %v332_v15 }
  0xfe   : > { %570 = vst [vmem:[%s179_s10 + $0x8] sm:$0xff] %v558_v19   ;;  %572 = vst [vmem:[%s179_s10 + $0x18] sm:$0xff] %v568_v21   ;;  %v406_v38 = vmul.f32 %v335_v22, %v335_v22 }
  0xff   : > { %554 = vst [vmem:[%s179_s10] sm:$0xff] %v553_v23   ;;  %v388_v28 = vadd.f32 %v603_v12, %v387_v24  ;;  %v409_v29 = vadd.f32 %v402_v25, %v401_v18  ;;  %571 = vst [vmem:[%s179_s10 + $0x10] sm:$0xff] %v563_v26  }
 0x101   : > { %v410_v31 = vadd.f32 %v409_v29, %v403_v27  ;;  %v389_v32 = vadd.f32 %v604_v16, %v388_v28 }
 0x103   : > { %v390_v34 = vadd.f32 %v389_v32, %v332_v15  ;;  %v411_v35 = vadd.f32 %v410_v31, %v404_v30 }
 0x105   : > { %v412_v36 = vadd.f32 %v411_v35, %v405_v33  ;;  %v391_v37 = vadd.f32 %v390_v34, %v335_v22 }
 0x107   : > { %v392_v40 = vadd.f32 %v607_v13, %v391_v37  ;;  %v413_v41 = vadd.f32 %v412_v36, %v406_v38 }
 0x109   : > { %v393_v43 = vadd.f32 %v608_v17, %v392_v40  ;;  %v414_v44 = vadd.f32 %v413_v41, %v407_v39 }
 0x10b   : > { %v394_v45 = vrot.slane %v393_v43, 4  ;;  %v415_v46 = vadd.f32 %v414_v44, %v408_v42 }
 0x10d   : > { %v395_v47 = vadd.f32 %v394_v45, %v393_v43  ;;  %v416_v48 = vrot.slane %v415_v46, 4 }
 0x10f   : > { %v396_v49 = vrot.slane %v395_v47, 2  ;;  %v417_v50 = vadd.f32 %v416_v48, %v415_v46 }
 0x111   : > { %v397_v51 = vadd.f32 %v396_v49, %v395_v47  ;;  %v418_v52 = vrot.slane %v417_v50, 2 }
 0x113   : > { %v398_v53 = vrot.slane %v397_v51, 1  ;;  %v419_v54 = vadd.f32 %v418_v52, %v417_v50 }
 0x115   : > { %v399_v55 = vadd.f32 %v398_v53, %v397_v51  ;;  %v420_v56 = vrot.slane %v419_v54, 1 }
 0x117   : > { %400 = vst [vmem:[%s184_s16] sm:$0x1] %v399_v55  ;;  %v421_v57 = vadd.f32 %v420_v56, %v419_v54 }
 0x119   : > { %422 = vst [vmem:[%s184_s16 + $0x1] sm:$0x1] %v421_v57 }
 0x11a PF: > { %s14_s12 = sadd.s32 1, %s651_s12  }
 0x11b   : > { %p11_p5 = scmp.ge.s32.totalorder %s14_s12, 4  }
 0x11d   :  { %13 = sbr.rel (!%p11_p5) target bundleno = 1 (0x1), region = 70 }

// kernel: bottleneck_forward.9
= control target key start
LH: loop header
LB: loop body
LE: loop exit
PB: predicated region body
PF: predicated region fallthrough
CT: control target
= control target key end

     0   :  { %11 = vsyncpa [#allocation3], 0  ;;  %s842_s0 = inlined_call_operand.vmem [shape: bf16[128,128], index: 0, kind: input, shape index: {}]   ;;  %s843_s1 = inlined_call_operand.vmem [shape: f32[1,128], index: 1, kind: input, shape index: {}]   ;;  %s844_s2 = inlined_call_operand.vmem [shape: f32[1,128], index: 2, kind: input, shape index: {}]   ;;  %s845_s3 = inlined_call_operand.vmem [shape: bf16[128,128], index: 3, kind: input, shape index: {}]   ;;  %s846_s4 = inlined_call_operand.vmem [shape: f32[1,128], index: 4, kind: input, shape index: {}]   ;;  %s847_s5 = inlined_call_operand.vmem [shape: f32[1,128], index: 5, kind: input, shape index: {}]   ;;  %s848_s6 = inlined_call_operand.hbm [shape: f32[128,128], index: 6, kind: output, shape index: {}]  }
   0x1   :  { %13 = vsyncpa [#allocation3 + $0x1], 0  ;;  %s679_s21 = smov 0   ;;  %s681_s22 = smov 0  }
   0x2   :  { %s683_s23 = smov 0   ;;  %s685_s24 = smov 0  }
   0x3 LB: > { %s700_s25 = sadd.s32 4294967295, %s639_s24   ;;  %s479_s26 = sadd.s32 4294967294, %s639_s24   ;;  %s639_s24 = sphi %s685_s24, %s854_s24   ;;  %s635_s23 = sphi %s683_s23, %s853_s23   ;;  %s631_s22 = sphi %s681_s22, %s852_s22   ;;  %s627_s21 = sphi %s679_s21, %s851_s21  }
   0x4   : > { %s704_s27 = sadd.s32 1, %s639_s24   ;;  %s162_s28 = sadd.s32 1, %s635_s23 }
   0x5   : > { %s159_s29 = ssub.s32 %s639_s24, %s704_s27  ;;  %p172_p0 = scmp.ne.s32.totalorder %s635_s23, %s631_s22 }
   0x6   : > { %p160_p1 = scmp.eq.s32.totalorder %s159_s29, 0  ;;  %p173_p2 = scmp.eq.s32.totalorder %s700_s25, 1 }
   0x7   : > { %p178_p3 = scmp.ne.s32.totalorder %s631_s22, %s627_s21  ;;  %p179_p4 = scmp.eq.s32.totalorder %s479_s26, 1 }
   0x8   : > { %s715_s30 = scalar_select %p160_p1, %s635_s23, %s162_s28  }
   0x9   : > { %p717_p5 = por %p173_p2, %p172_p0  ;;  %p721_p6 = por %p179_p4, %p178_p3 }
   0xa   : > { %p482_p7 = scmp.ge.s32.totalorder %s639_s24, 1  ;;  %p227_p8 = scmp.lt.s32.totalorder %s639_s24, 3 }
   0xc   : > { %p228_p9 = pnand %p482_p7, %p227_p8 }
   0xd   : > { %s484_s9 = sshll.u32 (!%p228_p9), %s700_s25, 3  ;;  %v741_v0 = vld [vmem:[%s843_s1] ss:$0 sm:$0xff] (!%p228_p9)  ;;  %s259_s29 = sand.u32 (!%p228_p9), 1, %s631_s22  }
   0xe   : > { %231 = sbr.rel (%p228_p9) target bundleno = 64 (0x40), region = 44  ;;  %p263_p10 = scmp.lt.s32.totalorder (!%p228_p9), %s484_s9, 15  ;;  %v746_v1 = vld [vmem:[%s846_s4] ss:$0 sm:$0xff] (!%p228_p9) }
   0xf   : > { %v755_v10 = vld [vmem:[%s844_s2] ss:$0 sm:$0xff] (!%p228_p9)  ;;  %s483_s11 = sshll.u32 (!%p228_p9), %s259_s29, 6  ;;  %s497_s14 = sshll.u32 (!%p228_p9), %s700_s25, 10 }
  0x10   : > { %v491_v29 = vld [vmem:[%s847_s5] ss:$0 sm:$0xff] (!%p228_p9)  ;;  %s261_s12 = scalar_lea.vmem (!%p228_p9), [#allocation2], %s483_s11  ;;  %s797_s17 = scalar_lea.hbm (!%p228_p9), %s848_s6, %s497_s14 }
  0x11   : > { %s801_s18 = scalar_lea.sflag (!%p228_p9), [#allocation3], %s259_s29  ;;  %s641_s25 = smov (!%p228_p9), [#allocation2]  }
  0x12   : > { %s581_s20 = sshll.u32 (!%p228_p9), %s641_s25, 4  ;;  %s582_s20 = int_to_ptr.vmem [resolvable:$false] %s581_s20 }
  0x13   : > { %s583_s26 = scalar_lea.vmem (!%p228_p9), %s582_s20, 2048 }
  0x15   : > { %s856_s9 = smov (!%p263_p10, %s484_s9), 15 }
  0x16   : > { %s485_s10 = sshll.u32 %s856_s9, 2 }
  0x17   : > { %s731_s13 = scalar_lea.vmem %s842_s0, %s485_s10  ;;  %s736_s16 = scalar_lea.vmem %s845_s3, %s485_s10 }
  0x18   : > { %v499_v2 = vld [vmem:[%s731_s13] sm:$0xff]   ;;  %v530_v4 = vld [vmem:[%s731_s13 + $0x8] sm:$0xff]   ;;  %v531_v15 = vld [vmem:[%s731_s13 + $0x10] sm:$0xff]  }
  0x19   : > { %v515_v3 = vld [vmem:[%s736_s16] sm:$0xff]   ;;  %v500_v5 = vunpack.c.l.bf16 %v499_v2  ;;  %v501_v7 = vunpack.c.h.bf16 %v499_v2  ;;  %v533_v9 = vld [vmem:[%s736_s16 + $0x8] sm:$0xff]   ;;  %v504_v11 = vunpack.c.l.bf16 %v530_v4  ;;  %v505_v13 = vunpack.c.h.bf16 %v530_v4  ;;  %v534_v16 = vld [vmem:[%s736_s16 + $0x10] sm:$0xff]  }
  0x1a   : > { %v516_v6 = vunpack.c.l.bf16 %v515_v3  ;;  %v517_v8 = vunpack.c.h.bf16 %v515_v3  ;;  %v520_v12 = vunpack.c.l.bf16 %v533_v9  ;;  %v521_v14 = vunpack.c.h.bf16 %v533_v9  ;;  %v532_v34 = vld [vmem:[%s731_s13 + $0x18] sm:$0xff]   ;;  %s405_s13 = sshll.u32 %s261_s12, 4  ;;  %s792_s13 = int_to_ptr.vmem [resolvable:$true] %s405_s13 }
  0x1b   : > { %v298_v17 = vmul.f32 %v500_v5, %v741_v0  ;;  %v299_v19 = vmul.f32 %v501_v7, %v741_v0  ;;  %v300_v21 = vmul.f32 %v504_v11, %v741_v0  ;;  %v301_v23 = vmul.f32 %v505_v13, %v741_v0  ;;  %v535_v39 = vld [vmem:[%s736_s16 + $0x18] sm:$0xff]   ;;  %s577_s19 = scalar_lea.vmem %s792_s13, 1024  ;;  %p584_p0 = scmp.lt.s32.totalorder %s792_s13, %s582_s20 }
  0x1c   : > { %v344_v18 = vmul.f32 %v516_v6, %v746_v1  ;;  %v345_v20 = vmul.f32 %v517_v8, %v746_v1  ;;  %v346_v22 = vmul.f32 %v520_v12, %v746_v1  ;;  %v347_v24 = vmul.f32 %v521_v14, %v746_v1  ;;  %p578_p11 = scmp.ne.s32.totalorder %s792_s13, %s577_s19  ;;  %p585_p1 = scmp.lt.s32.totalorder %s583_s26, %s577_s19 }
  0x1d   : > { %v313_v25 = vadd.f32 %v755_v10, %v298_v17  ;;  %v314_v26 = vadd.f32 %v755_v10, %v299_v19  ;;  %v508_v27 = vunpack.c.l.bf16 %v531_v15  ;;  %v524_v28 = vunpack.c.l.bf16 %v534_v16 }
  0x1e   : > { %v315_v30 = vadd.f32 %v755_v10, %v300_v21  ;;  %v316_v31 = vadd.f32 %v755_v10, %v301_v23  ;;  %v509_v32 = vunpack.c.h.bf16 %v531_v15  ;;  %v525_v33 = vunpack.c.h.bf16 %v534_v16  ;;  %p579_p12 = pnand %p578_p11, %p717_p5  ;;  %p586_p2 = por %p585_p1, %p584_p0 }
  0x1f   : > { %v352_v35 = vadd.f32 %v344_v18, %v313_v25  ;;  %v353_v36 = vadd.f32 %v345_v20, %v314_v26  ;;  %v302_v37 = vmul.f32 %v508_v27, %v741_v0  ;;  %v348_v38 = vmul.f32 %v524_v28, %v746_v1 }
  0x20   : > { %v354_v40 = vadd.f32 %v346_v22, %v315_v30  ;;  %v355_v41 = vadd.f32 %v347_v24, %v316_v31  ;;  %v303_v42 = vmul.f32 %v509_v32, %v741_v0  ;;  %v349_v43 = vmul.f32 %v525_v33, %v746_v1  ;;  %p580_p13 = pneg %p579_p12 }
  0x21   : > { %v367_v44 = vadd.f32 %v491_v29, %v352_v35  ;;  %v368_v45 = vadd.f32 %v491_v29, %v353_v36  ;;  %v317_v46 = vadd.f32 %v755_v10, %v302_v37  ;;  %v512_v47 = vunpack.c.l.bf16 %v532_v34 }
  0x22   : > { %v369_v48 = vadd.f32 %v491_v29, %v354_v40  ;;  %v370_v49 = vadd.f32 %v491_v29, %v355_v41  ;;  %v318_v50 = vadd.f32 %v755_v10, %v303_v42  ;;  %v528_v51 = vunpack.c.l.bf16 %v535_v39  ;;  %p587_p3 = pnand %p586_p2, %p580_p13 }
  0x23   : > { %v375_v52 = vmax.f32 %v367_v44, 0.0  ;;  %v376_v53 = vmax.f32 %v368_v45, 0.0  ;;  %v356_v54 = vadd.f32 %v348_v38, %v317_v46  ;;  %v304_v55 = vmul.f32 %v512_v47, %v741_v0 }
  0x24   : > { %v377_v56 = vmax.f32 %v369_v48, 0.0  ;;  %v378_v57 = vmax.f32 %v370_v49, 0.0  ;;  %v357_v58 = vadd.f32 %v349_v43, %v318_v50  ;;  %v350_v59 = vmul.f32 %v528_v51, %v746_v1 }
  0x25   : > { %383 = vst [vmem:[%s261_s12] sm:$0xff] %v375_v52  ;;  %384 = vst [vmem:[%s261_s12 + $0x8] sm:$0xff] %v376_v53  ;;  %v371_v60 = vadd.f32 %v491_v29, %v356_v54  ;;  %v319_v61 = vadd.f32 %v755_v10, %v304_v55  ;;  %v513_v62 = vunpack.c.h.bf16 %v532_v34  ;;  %v529_v63 = vunpack.c.h.bf16 %v535_v39 }
  0x26   : > { %385 = vst [vmem:[%s261_s12 + $0x10] sm:$0xff] %v377_v56  ;;  %386 = vst [vmem:[%s261_s12 + $0x18] sm:$0xff] %v378_v57  ;;  %v372_v2 = vadd.f32 %v491_v29, %v357_v58 }
  0x27   : > { %v379_v3 = vmax.f32 %v371_v60, 0.0  ;;  %v358_v4 = vadd.f32 %v350_v59, %v319_v61  ;;  %v305_v5 = vmul.f32 %v513_v62, %v741_v0  ;;  %v351_v6 = vmul.f32 %v529_v63, %v746_v1 }
  0x28   : > { %v380_v7 = vmax.f32 %v372_v2, 0.0 }
  0x29   : > { %387 = vst [vmem:[%s261_s12 + $0x20] sm:$0xff] %v379_v3  ;;  %v373_v8 = vadd.f32 %v491_v29, %v358_v4  ;;  %v320_v9 = vadd.f32 %v755_v10, %v305_v5 }
  0x2a   : > { %388 = vst [vmem:[%s261_s12 + $0x28] sm:$0xff] %v380_v7 }
  0x2b   : > { %v381_v11 = vmax.f32 %v373_v8, 0.0  ;;  %v359_v12 = vadd.f32 %v351_v6, %v320_v9 }
  0x2d   : > { %389 = vst [vmem:[%s261_s12 + $0x30] sm:$0xff] %v381_v11  ;;  %v374_v13 = vadd.f32 %v491_v29, %v359_v12 }
  0x2f   : > { %v382_v0 = vmax.f32 %v374_v13, 0.0 }
  0x31   : > { %390 = vst [vmem:[%s261_s12 + $0x38] sm:$0xff] %v382_v0 }
  0x32   : > { %590 = shalt.err (!%p587_p3)
}
  0x33   : > { %s591_s28 = scalar_lea.hbm %s797_s17, 1024  ;;  %s595_s10 = scalar_lea.hbm %s848_s6, 2048 }
  0x34   : > { %p592_p4 = scmp.ne.s32.totalorder %s797_s17, %s591_s28  ;;  %p596_p9 = scmp.lt.u32.totalorder %s797_s17, %s848_s6 }
  0x35   : > { %p597_p10 = scmp.lt.u32.totalorder %s595_s10, %s591_s28  ;;  %p599_p12 = scmp.lt.u32.totalorder %s591_s28, %s797_s17 }
  0x36   : > { %p593_p7 = pnand %p592_p4, %p717_p5 }
  0x37   : > { %p598_p11 = por %p597_p10, %p596_p9 }
  0x38   : > { %p594_p8 = pneg %p593_p7 }
  0x39   : > { %p600_p13 = por %p599_p12, %p598_p11 }
  0x3b   : > { %p601_p0 = pnand %p600_p13, %p594_p8 }
  0x3d   : > { %604 = shalt.err (!%p601_p0)
}
  0x3e   : > { %s642_s14 = smov 128   ;;  %s643_s15 = smov 8  }
  0x3f   : > { %536 = dma.vmem_to_hbm [thread:$0]  (%p717_p5), %s792_s13, 1024, %s797_s17, %s801_s18, %s642_s14, %s642_s14, %s643_s15  }
  0x40 PF: > { %p542_p1 = scmp.ge.s32.totalorder %s639_s24, 2  ;;  %s420_s16 = sand.u32 1, %s627_s21  }
  0x41   : > { %s421_s19 = scalar_lea.sflag [#allocation3], %s420_s16 }
  0x42   : > { %p539_p2 = pnand %p542_p1, %p721_p6 }
  0x44   : > { %622 = dma.done.wait (!%p539_p2), %s421_s19, 1024  }
  0x45   : > { %624 = vsyncadd (!%p539_p2), %s421_s19, 4294966272  ;;  %p16_p3 = scmp.ge.s32.totalorder %s704_s27, 4   ;;  %s851_s21 = smov %s631_s22 }
  0x46   : > { %s852_s22 = smov %s635_s23  ;;  %s853_s23 = smov %s715_s30 }
  0x47   : > { %s854_s24 = smov %s704_s27  ;;  %18 = sbr.rel (!%p16_p3) target bundleno = 3 (0x3), region = 82 }
  0x4e   :  { %426 = vsyncpa [#allocation3], 1 }
  0x4f   :  { %428 = vsyncpa [#allocation3 + $0x1], 1 }

</bundles_post_ra>
